<compile_context>
chip_gen: v6e
topology: v6e:2x2x1
jax: 0.10.0
libtpu: 0.0.40
codegen_flags: <defaults>
</compile_context>

<pallas_src>
import functools
import math

import jax
import jax.numpy as jnp
from jax.experimental import pallas as pl
from jax.experimental.pallas import tpu as pltpu


def _default_vmem_limit():
    """Per-generation scoped-VMEM limit: leave headroom on v7x (64 MiB/TC), use more on 128 MiB parts."""
    try:
        cap = int(pltpu.get_tpu_info().vmem_capacity_bytes)
    except Exception:
        return 48 * 1024 * 1024
    if cap <= 80 * 1024 * 1024:      # v7x: 64 MiB per TensorCore
        return 40 * 1024 * 1024
    return 96 * 1024 * 1024          # v5e / v6e: 128 MiB per TensorCore


VMEM_LIMIT = _default_vmem_limit()


def _tile(dim, target, granule):
    """Largest divisor of `dim` that is <= target and a multiple of `granule` (fallback: dim)."""
    if dim <= target or dim % granule != 0:
        return dim
    t = (min(target, dim) // granule) * granule
    while t >= granule:
        if dim % t == 0:
            return t
        t -= granule
    return dim


# ----------------------------- Pallas kernels ------------------------------

def _linear_kernel(x_ref, w_ref, b_ref, o_ref, acc_ref, *, act):
    """K-tiled matmul with f32 accumulator; bias (+ optional GELU) fused in the epilogue."""
    @pl.when(pl.program_id(2) == 0)
    def _():
        acc_ref[...] = jnp.zeros_like(acc_ref)

    acc_ref[...] += jnp.dot(x_ref[...], w_ref[...], preferred_element_type=jnp.float32)

    @pl.when(pl.program_id(2) == pl.num_programs(2) - 1)
    def _():
        y = acc_ref[...] + b_ref[...].astype(jnp.float32)
        if act == "gelu":
            y = jax.nn.gelu(y, approximate=True)
        o_ref[...] = y.astype(o_ref.dtype)


def linear(x, w, b, act=None, out_dtype=jnp.bfloat16, tm_t=512, tn_t=512, tk_t=1024):
    """y = act(x @ w + b); x:(M,K) bf16, w:(K,N) bf16, b:(N,) f32 -> (M,N) out_dtype."""
    M, K = x.shape
    N = w.shape[1]
    tm = _tile(M, tm_t, 8)
    tn = _tile(N, tn_t, 128)
    tk = _tile(K, tk_t, 128)
    grid = (M // tm, N // tn, K // tk)
    return pl.pallas_call(
        functools.partial(_linear_kernel, act=act),
        out_shape=jax.ShapeDtypeStruct((M, N), out_dtype),
        grid=grid,
        in_specs=[
            pl.BlockSpec((tm, tk), lambda i, j, k: (i, k)),
            pl.BlockSpec((tk, tn), lambda i, j, k: (k, j)),
            pl.BlockSpec((1, tn), lambda i, j, k: (0, j)),
        ],
        out_specs=pl.BlockSpec((tm, tn), lambda i, j, k: (i, j)),
        scratch_shapes=[pltpu.VMEM((tm, tn), jnp.float32)],
        compiler_params=pltpu.CompilerParams(
            dimension_semantics=("parallel", "parallel", "arbitrary"),
            vmem_limit_bytes=VMEM_LIMIT),
    )(x, w, b.reshape(1, N))


def _linear_res_ln_kernel(x_ref, w_ref, b_ref, res_ref, g_ref, beta_ref, o_ref, acc_ref, *, eps):
    """K-tiled matmul with fused bias + residual-add + LayerNorm epilogue (f32 statistics)."""
    @pl.when(pl.program_id(1) == 0)
    def _():
        acc_ref[...] = jnp.zeros_like(acc_ref)

    acc_ref[...] += jnp.dot(x_ref[...], w_ref[...], preferred_element_type=jnp.float32)

    @pl.when(pl.program_id(1) == pl.num_programs(1) - 1)
    def _():
        y = acc_ref[...] + b_ref[...].astype(jnp.float32) + res_ref[...].astype(jnp.float32)
        mu = jnp.mean(y, axis=-1, keepdims=True)
        var = jnp.mean((y - mu) ** 2, axis=-1, keepdims=True)
        yn = (y - mu) * jax.lax.rsqrt(var + eps)
        o_ref[...] = (yn * g_ref[...].astype(jnp.float32)
                      + beta_ref[...].astype(jnp.float32)).astype(o_ref.dtype)


def linear_res_ln(x, w, b, res, g, beta, eps=1e-7, out_dtype=jnp.bfloat16, tm_t=512, tk_t=1024):
    """LayerNorm((x @ w + b) + res); x:(M,K), w:(K,N), res:(M,N). N kept whole (LN axis)."""
    M, K = x.shape
    N = w.shape[1]
    tm = _tile(M, tm_t, 8)
    tk = _tile(K, tk_t, 128)
    grid = (M // tm, K // tk)
    return pl.pallas_call(
        functools.partial(_linear_res_ln_kernel, eps=eps),
        out_shape=jax.ShapeDtypeStruct((M, N), out_dtype),
        grid=grid,
        in_specs=[
            pl.BlockSpec((tm, tk), lambda i, k: (i, k)),
            pl.BlockSpec((tk, N), lambda i, k: (k, 0)),
            pl.BlockSpec((1, N), lambda i, k: (0, 0)),
            pl.BlockSpec((tm, N), lambda i, k: (i, 0)),
            pl.BlockSpec((1, N), lambda i, k: (0, 0)),
            pl.BlockSpec((1, N), lambda i, k: (0, 0)),
        ],
        out_specs=pl.BlockSpec((tm, N), lambda i, k: (i, 0)),
        scratch_shapes=[pltpu.VMEM((tm, N), jnp.float32)],
        compiler_params=pltpu.CompilerParams(
            dimension_semantics=("parallel", "arbitrary"),
            vmem_limit_bytes=VMEM_LIMIT),
    )(x, w, b.reshape(1, N), res, g.reshape(1, N), beta.reshape(1, N))


def _ln_mask_kernel(x_ref, m_ref, g_ref, b_ref, o_ref, *, eps):
    """Row-wise LayerNorm over the hidden axis, then multiply by the attention mask."""
    x = x_ref[...].astype(jnp.float32)
    mu = jnp.mean(x, axis=-1, keepdims=True)
    var = jnp.mean((x - mu) ** 2, axis=-1, keepdims=True)
    y = (x - mu) * jax.lax.rsqrt(var + eps) * g_ref[...] + b_ref[...]
    o_ref[...] = (y * m_ref[...]).astype(o_ref.dtype)


def ln_mask(x, mask, g, b, eps=1e-7, out_dtype=jnp.bfloat16, tm_t=2048):
    M, H = x.shape
    tm = _tile(M, tm_t, 8)
    return pl.pallas_call(
        functools.partial(_ln_mask_kernel, eps=eps),
        out_shape=jax.ShapeDtypeStruct((M, H), out_dtype),
        grid=(M // tm,),
        in_specs=[
            pl.BlockSpec((tm, H), lambda i: (i, 0)),
            pl.BlockSpec((tm, 1), lambda i: (i, 0)),
            pl.BlockSpec((1, H), lambda i: (0, 0)),
            pl.BlockSpec((1, H), lambda i: (0, 0)),
        ],
        out_specs=pl.BlockSpec((tm, H), lambda i: (i, 0)),
        compiler_params=pltpu.CompilerParams(
            dimension_semantics=("parallel",),
            vmem_limit_bytes=VMEM_LIMIT),
    )(x, mask, g.reshape(1, H), b.reshape(1, H))


def _attention_kernel(q_ref, k_ref, v_ref, bias_ref, o_ref, *, nH, Dh):
    """Per-(batch, q-tile) attention; Q/K/V arrive as separate H-wide blocks of the fused QKV buffer."""
    q = q_ref[0]                               # (tq, H) bf16; 1/sqrt(Dh) already folded into W_q/b_q
    k = k_ref[0]                               # (S, H)  bf16
    v = v_ref[0]                               # (S, H)  bf16
    bias = bias_ref[0].astype(jnp.float32)     # (1, S) additive mask bias
    outs = []
    for h in range(nH):
        qh = q[:, h * Dh:(h + 1) * Dh]
        kh = k[:, h * Dh:(h + 1) * Dh]
        vh = v[:, h * Dh:(h + 1) * Dh]
        s = jax.lax.dot_general(qh, kh, (((1,), (1,)), ((), ())),
                                preferred_element_type=jnp.float32) + bias     # (tq, S) f32
        m = jnp.max(s, axis=-1, keepdims=True)
        p = jnp.exp(s - m)
        p = p * pl.reciprocal(jnp.sum(p, axis=-1, keepdims=True), approx=True)
        # cast per-head result to bf16 immediately to halve live-range pressure
        outs.append(jnp.dot(p.astype(jnp.bfloat16), vh,
                            preferred_element_type=jnp.float32).astype(o_ref.dtype))
    o_ref[0] = jnp.concatenate(outs, axis=-1)   # lane-dense (tq, H) store


def attention(qkv, bias, *, nH, Dh, tq_t=256):
    """qkv:(B,S,3H) bf16 fused projection (Q pre-scaled), bias:(B,1,S) f32 -> (B,S,H) bf16.

    Requires H to be a multiple of 128 so Q/K/V can be addressed as H-wide column blocks.
    """
    B, S, threeH = qkv.shape
    H = nH * Dh
    tq = _tile(S, tq_t, 8)
    return pl.pallas_call(
        functools.partial(_attention_kernel, nH=nH, Dh=Dh),
        out_shape=jax.ShapeDtypeStruct((B, S, H), jnp.bfloat16),
        grid=(B, S // tq),
        in_specs=[
            pl.BlockSpec((1, tq, H), lambda b, qi: (b, qi, 0)),   # Q rows for this tile
            pl.BlockSpec((1, S, H), lambda b, qi: (b, 0, 1)),     # full K rows (resident per b)
            pl.BlockSpec((1, S, H), lambda b, qi: (b, 0, 2)),     # full V rows (resident per b)
            pl.BlockSpec((1, 1, S), lambda b, qi: (b, 0, 0)),
        ],
        out_specs=pl.BlockSpec((1, tq, H), lambda b, qi: (b, qi, 0)),
        compiler_params=pltpu.CompilerParams(
            dimension_semantics=("parallel", "parallel"),
            vmem_limit_bytes=VMEM_LIMIT),
    )(qkv, qkv, qkv, bias)


# --------------------------- model construction ----------------------------

def init_params(key, *, vocab, H, nH, FF, L, max_pos, type_vocab, num_labels):
    std = 0.02
    keys = iter(jax.random.split(key, 16 + 12 * L))

    def dense(kin, kout):
        return jax.random.normal(next(keys), (kin, kout), jnp.float32) * std

    params = {
        "word_emb": jax.random.normal(next(keys), (vocab, H), jnp.float32) * std,
        "pos_emb": jax.random.normal(next(keys), (max_pos, H), jnp.float32) * std,
        "type_emb": jax.random.normal(next(keys), (type_vocab, H), jnp.float32) * std,
        "emb_ln_g": jnp.ones((H,), jnp.float32),
        "emb_ln_b": jnp.zeros((H,), jnp.float32),
        "layers": [],
        "w_pool": dense(H, H),
        "b_pool": jnp.zeros((H,), jnp.float32),
        "w_cls": dense(H, num_labels),
        "b_cls": jnp.zeros((num_labels,), jnp.float32),
    }
    for _ in range(L):
        params["layers"].append({
            "w_qkv": dense(H, 3 * H), "b_qkv": jnp.zeros((3 * H,), jnp.float32),
            "w_o": dense(H, H),       "b_o": jnp.zeros((H,), jnp.float32),
            "ln1_g": jnp.ones((H,), jnp.float32), "ln1_b": jnp.zeros((H,), jnp.float32),
            "w_ff1": dense(H, FF),    "b_ff1": jnp.zeros((FF,), jnp.float32),
            "w_ff2": dense(FF, H),    "b_ff2": jnp.zeros((H,), jnp.float32),
            "ln2_g": jnp.ones((H,), jnp.float32), "ln2_b": jnp.zeros((H,), jnp.float32),
        })
    return params


def prepare_params(params, *, H, nH):
    """One-time (outside jit) weight prep: bf16 matmul weights, 1/sqrt(Dh) folded into W_q/b_q.

    LayerNorm gains/biases, matmul biases, embeddings and the tiny pooler/classifier head stay f32.
    """
    Dh = H // nH
    scale = 1.0 / math.sqrt(Dh)
    qscale = jnp.concatenate([jnp.full((H,), scale, jnp.float32),
                              jnp.ones((2 * H,), jnp.float32)])
    prepared = dict(params)
    layers = []
    for lyr in params["layers"]:
        layers.append({
            "w_qkv": (lyr["w_qkv"] * qscale[None, :]).astype(jnp.bfloat16),
            "b_qkv": lyr["b_qkv"] * qscale,
            "w_o": lyr["w_o"].astype(jnp.bfloat16), "b_o": lyr["b_o"],
            "ln1_g": lyr["ln1_g"], "ln1_b": lyr["ln1_b"],
            "w_ff1": lyr["w_ff1"].astype(jnp.bfloat16), "b_ff1": lyr["b_ff1"],
            "w_ff2": lyr["w_ff2"].astype(jnp.bfloat16), "b_ff2": lyr["b_ff2"],
            "ln2_g": lyr["ln2_g"], "ln2_b": lyr["ln2_b"],
        })
    prepared["layers"] = layers
    return prepared


def deberta_classifier_forward(params, input_ids, token_type_ids, attention_mask, *, H, nH):
    """params must be pre-processed by prepare_params (bf16 weights, Q scale folded in)."""
    B, S = input_ids.shape
    M = B * S
    Dh = H // nH
    bf16 = jnp.bfloat16
    maskf = attention_mask.astype(jnp.float32)                    # (B, S)

    # Embeddings (gathers are glue) + fused LayerNorm*mask kernel, as in DebertaEmbeddings.
    emb = (params["word_emb"][input_ids]
           + params["pos_emb"][jnp.arange(S)][None, :, :]
           + params["type_emb"][token_type_ids]).astype(bf16)     # (B, S, H)
    h = ln_mask(emb.reshape(M, H), maskf.reshape(M, 1),
                params["emb_ln_g"], params["emb_ln_b"])           # (M, H) bf16

    attn_bias = ((1.0 - maskf) * jnp.float32(-1e9)).reshape(B, 1, S)

    for lyr in params["layers"]:
        x2 = h                                                           # (M, H) bf16
        qkv = linear(x2, lyr["w_qkv"], lyr["b_qkv"])                     # (M, 3H) bf16, Q pre-scaled
        ctx = attention(qkv.reshape(B, S, 3 * H), attn_bias,
                        nH=nH, Dh=Dh)                                    # (B, S, H) bf16
        h1 = linear_res_ln(ctx.reshape(M, H), lyr["w_o"], lyr["b_o"],
                           x2, lyr["ln1_g"], lyr["ln1_b"])               # attn out + residual + LN
        ff = linear(h1, lyr["w_ff1"], lyr["b_ff1"], act="gelu")          # (M, FF) bf16
        h = linear_res_ln(ff, lyr["w_ff2"], lyr["b_ff2"],
                          h1, lyr["ln2_g"], lyr["ln2_b"])                # FF2 + residual + LN

    # ContextPooler on the [CLS] token + classification head: tiny (B rows, 2 labels) ->
    # plain XLA in f32, avoiding a pallas_call with a sub-128-lane masked-store output.
    cls = h.reshape(B, S, H)[:, 0, :].astype(jnp.float32)
    pooled = jax.nn.gelu(cls @ params["w_pool"] + params["b_pool"], approximate=True)
    logits = pooled @ params["w_cls"] + params["b_cls"]
    return logits.astype(jnp.float32)


# --------------------------------- main -------------------------------------

if __name__ == "__main__":
    # Small but lane-aligned shapes: H multiple of 128 so Q/K/V column blocks are valid.
    B, S, H, nH, FF, L = 2, 8, 128, 4, 256, 2
    VOCAB, MAX_POS, TYPE_VOCAB, NUM_LABELS = 128, 512, 2, 2

    key = jax.random.PRNGKey(0)
    k_param, k_ids = jax.random.split(key)

    params = init_params(k_param, vocab=VOCAB, H=H, nH=nH, FF=FF, L=L,
                         max_pos=MAX_POS, type_vocab=TYPE_VOCAB, num_labels=NUM_LABELS)
    params = prepare_params(params, H=H, nH=nH)   # one-time bf16 cast + scale folding, outside jit

    input_ids = jax.random.randint(k_ids, (B, S), 0, VOCAB, dtype=jnp.int32)
    token_type_ids = jnp.zeros((B, S), jnp.int32)
    # second example has 2 padding tokens at the end
    attention_mask = jnp.array([[1] * S, [1] * (S - 2) + [0] * 2], jnp.int32)

    fwd = jax.jit(functools.partial(deberta_classifier_forward, H=H, nH=nH))
    logits = fwd(params, input_ids, token_type_ids, attention_mask)
    logits = jax.block_until_ready(logits)

    assert logits.shape == (B, NUM_LABELS) and logits.dtype == jnp.float32
    assert bool(jnp.all(jnp.isfinite(logits)))
    print("KERNEL_OK")
</pallas_src>

<mosaic_0001>
module attributes {stable_mosaic.version = 11 : i64} {
  func.func @_attention_kernel(%arg0: i32, %arg1: i32, %arg2: memref<1x8x128xbf16, #tpu.memory_space<vmem>>, %arg3: memref<1x8x128xbf16, #tpu.memory_space<vmem>>, %arg4: memref<1x8x128xbf16, #tpu.memory_space<vmem>>, %arg5: memref<1x1x8xf32, #tpu.memory_space<vmem>>, %arg6: memref<1x8x128xbf16, #tpu.memory_space<vmem>>) attributes {dimension_semantics = [#tpu.dimension_semantics<parallel>, #tpu.dimension_semantics<parallel>], iteration_bounds = array<i64: 2, 1>, scalar_prefetch = 0 : i64, scratch_operands = 0 : i64, tpu.core_type = #tpu.core_type<tc>, window_params = [{transform_indices = @transform_0, window_bounds = array<i64: 1, 8, 128>}, {transform_indices = @transform_1, window_bounds = array<i64: 1, 8, 128>}, {transform_indices = @transform_2, window_bounds = array<i64: 1, 8, 128>}, {transform_indices = @transform_3, window_bounds = array<i64: 1, 1, 8>}, {transform_indices = @transform_4, window_bounds = array<i64: 1, 8, 128>}]} {
    %c0 = arith.constant 0 : index
    %c0_0 = arith.constant 0 : index
    %c0_1 = arith.constant 0 : index
    %0 = vector.load %arg2[%c0, %c0_0, %c0_1] : memref<1x8x128xbf16, #tpu.memory_space<vmem>>, vector<1x8x128xbf16>
    %1 = vector.shape_cast %0 : vector<1x8x128xbf16> to vector<8x128xbf16>
    %c0_2 = arith.constant 0 : index
    %c0_3 = arith.constant 0 : index
    %c0_4 = arith.constant 0 : index
    %2 = vector.load %arg3[%c0_2, %c0_3, %c0_4] : memref<1x8x128xbf16, #tpu.memory_space<vmem>>, vector<1x8x128xbf16>
    %3 = vector.shape_cast %2 : vector<1x8x128xbf16> to vector<8x128xbf16>
    %c0_5 = arith.constant 0 : index
    %c0_6 = arith.constant 0 : index
    %c0_7 = arith.constant 0 : index
    %4 = vector.load %arg4[%c0_5, %c0_6, %c0_7] : memref<1x8x128xbf16, #tpu.memory_space<vmem>>, vector<1x8x128xbf16>
    %5 = vector.shape_cast %4 : vector<1x8x128xbf16> to vector<8x128xbf16>
    %c0_8 = arith.constant 0 : index
    %c0_9 = arith.constant 0 : index
    %c0_10 = arith.constant 0 : index
    %6 = vector.load %arg5[%c0_8, %c0_9, %c0_10] : memref<1x1x8xf32, #tpu.memory_space<vmem>>, vector<1x1x8xf32>
    %7 = vector.shape_cast %6 : vector<1x1x8xf32> to vector<1x8xf32>
    %8 = vector.extract_strided_slice %1 {offsets = [0, 0], sizes = [8, 32], strides = [1, 1]} : vector<8x128xbf16> to vector<8x32xbf16>
    %9 = vector.extract_strided_slice %3 {offsets = [0, 0], sizes = [8, 32], strides = [1, 1]} : vector<8x128xbf16> to vector<8x32xbf16>
    %10 = vector.extract_strided_slice %5 {offsets = [0, 0], sizes = [8, 32], strides = [1, 1]} : vector<8x128xbf16> to vector<8x32xbf16>
    %cst = arith.constant dense<0.000000e+00> : vector<8x8xf32>
    %11 = tpu.matmul %8, %9, %cst {dimension_numbers = #tpu.dot_dimension_numbers<[1], [1], [0], [0], [0, 0, 1, 0], [], []>} : vector<8x32xbf16>, vector<8x32xbf16>, vector<8x8xf32> -> vector<8x8xf32>
    %12 = vector.broadcast %7 : vector<1x8xf32> to vector<8x8xf32>
    %13 = arith.addf %11, %12 : vector<8x8xf32>
    %cst_11 = arith.constant dense<0xFF800000> : vector<8xf32>
    %14 = vector.multi_reduction <maximumf>, %13, %cst_11 [1] : vector<8x8xf32> to vector<8xf32>
    %15 = vector.shape_cast %14 : vector<8xf32> to vector<8x1xf32>
    %16 = vector.broadcast %15 : vector<8x1xf32> to vector<8x8xf32>
    %17 = arith.subf %13, %16 : vector<8x8xf32>
    %18 = math.exp %17 : vector<8x8xf32>
    %cst_12 = arith.constant dense<0.000000e+00> : vector<8xf32>
    %19 = vector.multi_reduction <add>, %18, %cst_12 [1] : vector<8x8xf32> to vector<8xf32>
    %20 = vector.shape_cast %19 : vector<8xf32> to vector<8x1xf32>
    %21 = tpu.reciprocal %20 {approx = true} : vector<8x1xf32> -> vector<8x1xf32>
    %22 = vector.broadcast %21 : vector<8x1xf32> to vector<8x8xf32>
    %23 = arith.mulf %18, %22 : vector<8x8xf32>
    %24 = arith.truncf %23 : vector<8x8xf32> to vector<8x8xbf16>
    %cst_13 = arith.constant dense<0.000000e+00> : vector<8x32xf32>
    %25 = tpu.matmul %24, %10, %cst_13 {dimension_numbers = #tpu.dot_dimension_numbers<[1], [0], [0], [1], [0, 0, 1, 1], [], []>} : vector<8x8xbf16>, vector<8x32xbf16>, vector<8x32xf32> -> vector<8x32xf32>
    %26 = arith.truncf %25 : vector<8x32xf32> to vector<8x32xbf16>
    %27 = vector.extract_strided_slice %1 {offsets = [0, 32], sizes = [8, 32], strides = [1, 1]} : vector<8x128xbf16> to vector<8x32xbf16>
    %28 = vector.extract_strided_slice %3 {offsets = [0, 32], sizes = [8, 32], strides = [1, 1]} : vector<8x128xbf16> to vector<8x32xbf16>
    %29 = vector.extract_strided_slice %5 {offsets = [0, 32], sizes = [8, 32], strides = [1, 1]} : vector<8x128xbf16> to vector<8x32xbf16>
    %cst_14 = arith.constant dense<0.000000e+00> : vector<8x8xf32>
    %30 = tpu.matmul %27, %28, %cst_14 {dimension_numbers = #tpu.dot_dimension_numbers<[1], [1], [0], [0], [0, 0, 1, 0], [], []>} : vector<8x32xbf16>, vector<8x32xbf16>, vector<8x8xf32> -> vector<8x8xf32>
    %31 = vector.broadcast %7 : vector<1x8xf32> to vector<8x8xf32>
    %32 = arith.addf %30, %31 : vector<8x8xf32>
    %cst_15 = arith.constant dense<0xFF800000> : vector<8xf32>
    %33 = vector.multi_reduction <maximumf>, %32, %cst_15 [1] : vector<8x8xf32> to vector<8xf32>
    %34 = vector.shape_cast %33 : vector<8xf32> to vector<8x1xf32>
    %35 = vector.broadcast %34 : vector<8x1xf32> to vector<8x8xf32>
    %36 = arith.subf %32, %35 : vector<8x8xf32>
    %37 = math.exp %36 : vector<8x8xf32>
    %cst_16 = arith.constant dense<0.000000e+00> : vector<8xf32>
    %38 = vector.multi_reduction <add>, %37, %cst_16 [1] : vector<8x8xf32> to vector<8xf32>
    %39 = vector.shape_cast %38 : vector<8xf32> to vector<8x1xf32>
    %40 = tpu.reciprocal %39 {approx = true} : vector<8x1xf32> -> vector<8x1xf32>
    %41 = vector.broadcast %40 : vector<8x1xf32> to vector<8x8xf32>
    %42 = arith.mulf %37, %41 : vector<8x8xf32>
    %43 = arith.truncf %42 : vector<8x8xf32> to vector<8x8xbf16>
    %cst_17 = arith.constant dense<0.000000e+00> : vector<8x32xf32>
    %44 = tpu.matmul %43, %29, %cst_17 {dimension_numbers = #tpu.dot_dimension_numbers<[1], [0], [0], [1], [0, 0, 1, 1], [], []>} : vector<8x8xbf16>, vector<8x32xbf16>, vector<8x32xf32> -> vector<8x32xf32>
    %45 = arith.truncf %44 : vector<8x32xf32> to vector<8x32xbf16>
    %46 = vector.extract_strided_slice %1 {offsets = [0, 64], sizes = [8, 32], strides = [1, 1]} : vector<8x128xbf16> to vector<8x32xbf16>
    %47 = vector.extract_strided_slice %3 {offsets = [0, 64], sizes = [8, 32], strides = [1, 1]} : vector<8x128xbf16> to vector<8x32xbf16>
    %48 = vector.extract_strided_slice %5 {offsets = [0, 64], sizes = [8, 32], strides = [1, 1]} : vector<8x128xbf16> to vector<8x32xbf16>
    %cst_18 = arith.constant dense<0.000000e+00> : vector<8x8xf32>
    %49 = tpu.matmul %46, %47, %cst_18 {dimension_numbers = #tpu.dot_dimension_numbers<[1], [1], [0], [0], [0, 0, 1, 0], [], []>} : vector<8x32xbf16>, vector<8x32xbf16>, vector<8x8xf32> -> vector<8x8xf32>
    %50 = vector.broadcast %7 : vector<1x8xf32> to vector<8x8xf32>
    %51 = arith.addf %49, %50 : vector<8x8xf32>
    %cst_19 = arith.constant dense<0xFF800000> : vector<8xf32>
    %52 = vector.multi_reduction <maximumf>, %51, %cst_19 [1] : vector<8x8xf32> to vector<8xf32>
    %53 = vector.shape_cast %52 : vector<8xf32> to vector<8x1xf32>
    %54 = vector.broadcast %53 : vector<8x1xf32> to vector<8x8xf32>
    %55 = arith.subf %51, %54 : vector<8x8xf32>
    %56 = math.exp %55 : vector<8x8xf32>
    %cst_20 = arith.constant dense<0.000000e+00> : vector<8xf32>
    %57 = vector.multi_reduction <add>, %56, %cst_20 [1] : vector<8x8xf32> to vector<8xf32>
    %58 = vector.shape_cast %57 : vector<8xf32> to vector<8x1xf32>
    %59 = tpu.reciprocal %58 {approx = true} : vector<8x1xf32> -> vector<8x1xf32>
    %60 = vector.broadcast %59 : vector<8x1xf32> to vector<8x8xf32>
    %61 = arith.mulf %56, %60 : vector<8x8xf32>
    %62 = arith.truncf %61 : vector<8x8xf32> to vector<8x8xbf16>
    %cst_21 = arith.constant dense<0.000000e+00> : vector<8x32xf32>
    %63 = tpu.matmul %62, %48, %cst_21 {dimension_numbers = #tpu.dot_dimension_numbers<[1], [0], [0], [1], [0, 0, 1, 1], [], []>} : vector<8x8xbf16>, vector<8x32xbf16>, vector<8x32xf32> -> vector<8x32xf32>
    %64 = arith.truncf %63 : vector<8x32xf32> to vector<8x32xbf16>
    %65 = vector.extract_strided_slice %1 {offsets = [0, 96], sizes = [8, 32], strides = [1, 1]} : vector<8x128xbf16> to vector<8x32xbf16>
    %66 = vector.extract_strided_slice %3 {offsets = [0, 96], sizes = [8, 32], strides = [1, 1]} : vector<8x128xbf16> to vector<8x32xbf16>
    %67 = vector.extract_strided_slice %5 {offsets = [0, 96], sizes = [8, 32], strides = [1, 1]} : vector<8x128xbf16> to vector<8x32xbf16>
    %cst_22 = arith.constant dense<0.000000e+00> : vector<8x8xf32>
    %68 = tpu.matmul %65, %66, %cst_22 {dimension_numbers = #tpu.dot_dimension_numbers<[1], [1], [0], [0], [0, 0, 1, 0], [], []>} : vector<8x32xbf16>, vector<8x32xbf16>, vector<8x8xf32> -> vector<8x8xf32>
    %69 = vector.broadcast %7 : vector<1x8xf32> to vector<8x8xf32>
    %70 = arith.addf %68, %69 : vector<8x8xf32>
    %cst_23 = arith.constant dense<0xFF800000> : vector<8xf32>
    %71 = vector.multi_reduction <maximumf>, %70, %cst_23 [1] : vector<8x8xf32> to vector<8xf32>
    %72 = vector.shape_cast %71 : vector<8xf32> to vector<8x1xf32>
    %73 = vector.broadcast %72 : vector<8x1xf32> to vector<8x8xf32>
    %74 = arith.subf %70, %73 : vector<8x8xf32>
    %75 = math.exp %74 : vector<8x8xf32>
    %cst_24 = arith.constant dense<0.000000e+00> : vector<8xf32>
    %76 = vector.multi_reduction <add>, %75, %cst_24 [1] : vector<8x8xf32> to vector<8xf32>
    %77 = vector.shape_cast %76 : vector<8xf32> to vector<8x1xf32>
    %78 = tpu.reciprocal %77 {approx = true} : vector<8x1xf32> -> vector<8x1xf32>
    %79 = vector.broadcast %78 : vector<8x1xf32> to vector<8x8xf32>
    %80 = arith.mulf %75, %79 : vector<8x8xf32>
    %81 = arith.truncf %80 : vector<8x8xf32> to vector<8x8xbf16>
    %cst_25 = arith.constant dense<0.000000e+00> : vector<8x32xf32>
    %82 = tpu.matmul %81, %67, %cst_25 {dimension_numbers = #tpu.dot_dimension_numbers<[1], [0], [0], [1], [0, 0, 1, 1], [], []>} : vector<8x8xbf16>, vector<8x32xbf16>, vector<8x32xf32> -> vector<8x32xf32>
    %83 = arith.truncf %82 : vector<8x32xf32> to vector<8x32xbf16>
    %84 = tpu.concatenate %26, %45, %64, %83 in 1 : vector<8x32xbf16>, vector<8x32xbf16>, vector<8x32xbf16>, vector<8x32xbf16> -> vector<8x128xbf16>
    %c0_26 = arith.constant 0 : index
    %c0_27 = arith.constant 0 : index
    %c0_28 = arith.constant 0 : index
    %85 = vector.load %arg6[%c0_26, %c0_27, %c0_28] : memref<1x8x128xbf16, #tpu.memory_space<vmem>>, vector<1x8x128xbf16>
    %86 = vector.shape_cast %85 : vector<1x8x128xbf16> to vector<8x128xbf16>
    %87 = vector.shape_cast %84 : vector<8x128xbf16> to vector<1x8x128xbf16>
    tpu.vector_store %arg6[%c0_26, %c0_27, %c0_28], %87 {strides = array<i32>} : memref<1x8x128xbf16, #tpu.memory_space<vmem>>, vector<1x8x128xbf16>,
    return
  }
  func.func @transform_0(%arg0: i32, %arg1: i32) -> (i32, i32, i32) {
    %c0_i32 = arith.constant 0 : i32
    %c0_i32_0 = arith.constant 0 : i32
    return %arg0, %arg1, %c0_i32 : i32, i32, i32
  }
  func.func @transform_1(%arg0: i32, %arg1: i32) -> (i32, i32, i32) {
    %c0_i32 = arith.constant 0 : i32
    %c1_i32 = arith.constant 1 : i32
    %c0_i32_0 = arith.constant 0 : i32
    return %arg0, %c0_i32, %c1_i32 : i32, i32, i32
  }
  func.func @transform_2(%arg0: i32, %arg1: i32) -> (i32, i32, i32) {
    %c0_i32 = arith.constant 0 : i32
    %c2_i32 = arith.constant 2 : i32
    %c0_i32_0 = arith.constant 0 : i32
    return %arg0, %c0_i32, %c2_i32 : i32, i32, i32
  }
  func.func @transform_3(%arg0: i32, %arg1: i32) -> (i32, i32, i32) {
    %c0_i32 = arith.constant 0 : i32
    %c0_i32_0 = arith.constant 0 : i32
    %c0_i32_1 = arith.constant 0 : i32
    return %arg0, %c0_i32, %c0_i32_0 : i32, i32, i32
  }
  func.func @transform_4(%arg0: i32, %arg1: i32) -> (i32, i32, i32) {
    %c0_i32 = arith.constant 0 : i32
    %c0_i32_0 = arith.constant 0 : i32
    return %arg0, %arg1, %c0_i32 : i32, i32, i32
  }
}

module attributes {stable_mosaic.version = 11 : i64} {
  func.func @_linear_res_ln_kernel(%arg0: i32, %arg1: i32, %arg2: memref<16x128xbf16, #tpu.memory_space<vmem>>, %arg3: memref<128x128xbf16, #tpu.memory_space<vmem>>, %arg4: memref<1x128xf32, #tpu.memory_space<vmem>>, %arg5: memref<16x128xbf16, #tpu.memory_space<vmem>>, %arg6: memref<1x128xf32, #tpu.memory_space<vmem>>, %arg7: memref<1x128xf32, #tpu.memory_space<vmem>>, %arg8: memref<16x128xbf16, #tpu.memory_space<vmem>>, %arg9: memref<16x128xf32, #tpu.memory_space<vmem>>) attributes {dimension_semantics = [#tpu.dimension_semantics<parallel>, #tpu.dimension_semantics<arbitrary>], iteration_bounds = array<i64: 1, 1>, scalar_prefetch = 0 : i64, scratch_operands = 1 : i64, tpu.core_type = #tpu.core_type<tc>, window_params = [{transform_indices = @transform_0, window_bounds = array<i64: 16, 128>}, {transform_indices = @transform_1, window_bounds = array<i64: 128, 128>}, {pipeline_mode = #tpu.pipeline_mode<synchronous>, transform_indices = @transform_2, window_bounds = array<i64: 1, 128>}, {transform_indices = @transform_3, window_bounds = array<i64: 16, 128>}, {pipeline_mode = #tpu.pipeline_mode<synchronous>, transform_indices = @transform_4, window_bounds = array<i64: 1, 128>}, {pipeline_mode = #tpu.pipeline_mode<synchronous>, transform_indices = @transform_5, window_bounds = array<i64: 1, 128>}, {transform_indices = @transform_6, window_bounds = array<i64: 16, 128>}]} {
    %c0_i32 = arith.constant 0 : i32
    %0 = arith.cmpi eq, %arg1, %c0_i32 : i32
    %1 = arith.extui %0 : i1 to i32
    %c0_i32_0 = arith.constant 0 : i32
    %2 = arith.cmpi ne, %1, %c0_i32_0 : i32
    scf.if %2 {
      %cst_10 = arith.constant 0.000000e+00 : f32
      %12 = vector.broadcast %cst_10 : f32 to vector<16x128xf32>
      %c0_11 = arith.constant 0 : index
      %c0_12 = arith.constant 0 : index
      %13 = vector.load %arg9[%c0_11, %c0_12] : memref<16x128xf32, #tpu.memory_space<vmem>>, vector<16x128xf32>
      tpu.vector_store %arg9[%c0_11, %c0_12], %12 {strides = array<i32>} : memref<16x128xf32, #tpu.memory_space<vmem>>, vector<16x128xf32>,
    } else {
    }
    %c0 = arith.constant 0 : index
    %c0_1 = arith.constant 0 : index
    %3 = vector.load %arg9[%c0, %c0_1] : memref<16x128xf32, #tpu.memory_space<vmem>>, vector<16x128xf32>
    %c0_2 = arith.constant 0 : index
    %c0_3 = arith.constant 0 : index
    %4 = vector.load %arg2[%c0_2, %c0_3] : memref<16x128xbf16, #tpu.memory_space<vmem>>, vector<16x128xbf16>
    %c0_4 = arith.constant 0 : index
    %c0_5 = arith.constant 0 : index
    %5 = vector.load %arg3[%c0_4, %c0_5] : memref<128x128xbf16, #tpu.memory_space<vmem>>, vector<128x128xbf16>
    %cst = arith.constant dense<0.000000e+00> : vector<16x128xf32>
    %6 = tpu.matmul %4, %5, %cst {dimension_numbers = #tpu.dot_dimension_numbers<[1], [0], [0], [1], [0, 0, 1, 1], [], []>} : vector<16x128xbf16>, vector<128x128xbf16>, vector<16x128xf32> -> vector<16x128xf32>
    %7 = arith.addf %3, %6 : vector<16x128xf32>
    %c0_6 = arith.constant 0 : index
    %c0_7 = arith.constant 0 : index
    %8 = vector.load %arg9[%c0_6, %c0_7] : memref<16x128xf32, #tpu.memory_space<vmem>>, vector<16x128xf32>
    tpu.vector_store %arg9[%c0_6, %c0_7], %7 {strides = array<i32>} : memref<16x128xf32, #tpu.memory_space<vmem>>, vector<16x128xf32>,
    %c0_i32_8 = arith.constant 0 : i32
    %9 = arith.cmpi eq, %arg1, %c0_i32_8 : i32
    %10 = arith.extui %9 : i1 to i32
    %c0_i32_9 = arith.constant 0 : i32
    %11 = arith.cmpi ne, %10, %c0_i32_9 : i32
    scf.if %11 {
      %c0_10 = arith.constant 0 : index
      %c0_11 = arith.constant 0 : index
      %12 = vector.load %arg9[%c0_10, %c0_11] : memref<16x128xf32, #tpu.memory_space<vmem>>, vector<16x128xf32>
      %c0_12 = arith.constant 0 : index
      %c0_13 = arith.constant 0 : index
      %13 = vector.load %arg4[%c0_12, %c0_13] : memref<1x128xf32, #tpu.memory_space<vmem>>, vector<1x128xf32>
      %14 = vector.broadcast %13 : vector<1x128xf32> to vector<16x128xf32>
      %15 = arith.addf %12, %14 : vector<16x128xf32>
      %c0_14 = arith.constant 0 : index
      %c0_15 = arith.constant 0 : index
      %16 = vector.load %arg5[%c0_14, %c0_15] : memref<16x128xbf16, #tpu.memory_space<vmem>>, vector<16x128xbf16>
      %17 = arith.extf %16 : vector<16x128xbf16> to vector<16x128xf32>
      %18 = arith.addf %15, %17 : vector<16x128xf32>
      %cst_16 = arith.constant dense<0.000000e+00> : vector<16xf32>
      %19 = vector.multi_reduction <add>, %18, %cst_16 [1] : vector<16x128xf32> to vector<16xf32>
      %20 = vector.shape_cast %19 : vector<16xf32> to vector<16x1xf32>
      %cst_17 = arith.constant 1.280000e+02 : f32
      %21 = vector.broadcast %cst_17 : f32 to vector<16x1xf32>
      %22 = arith.divf %20, %21 : vector<16x1xf32>
      %23 = vector.broadcast %22 : vector<16x1xf32> to vector<16x128xf32>
      %24 = arith.subf %18, %23 : vector<16x128xf32>
      %25 = arith.mulf %24, %24 : vector<16x128xf32>
      %cst_18 = arith.constant dense<0.000000e+00> : vector<16xf32>
      %26 = vector.multi_reduction <add>, %25, %cst_18 [1] : vector<16x128xf32> to vector<16xf32>
      %27 = vector.shape_cast %26 : vector<16xf32> to vector<16x1xf32>
      %cst_19 = arith.constant 1.280000e+02 : f32
      %28 = vector.broadcast %cst_19 : f32 to vector<16x1xf32>
      %29 = arith.divf %27, %28 : vector<16x1xf32>
      %30 = vector.broadcast %22 : vector<16x1xf32> to vector<16x128xf32>
      %31 = arith.subf %18, %30 : vector<16x128xf32>
      %cst_20 = arith.constant 1.000000e-07 : f32
      %32 = vector.broadcast %cst_20 : f32 to vector<16x1xf32>
      %33 = arith.addf %29, %32 : vector<16x1xf32>
      %34 = math.rsqrt %33 : vector<16x1xf32>
      %35 = vector.broadcast %34 : vector<16x1xf32> to vector<16x128xf32>
      %36 = arith.mulf %31, %35 : vector<16x128xf32>
      %c0_21 = arith.constant 0 : index
      %c0_22 = arith.constant 0 : index
      %37 = vector.load %arg6[%c0_21, %c0_22] : memref<1x128xf32, #tpu.memory_space<vmem>>, vector<1x128xf32>
      %38 = vector.broadcast %37 : vector<1x128xf32> to vector<16x128xf32>
      %39 = arith.mulf %36, %38 : vector<16x128xf32>
      %c0_23 = arith.constant 0 : index
      %c0_24 = arith.constant 0 : index
      %40 = vector.load %arg7[%c0_23, %c0_24] : memref<1x128xf32, #tpu.memory_space<vmem>>, vector<1x128xf32>
      %41 = vector.broadcast %40 : vector<1x128xf32> to vector<16x128xf32>
      %42 = arith.addf %39, %41 : vector<16x128xf32>
      %43 = arith.truncf %42 : vector<16x128xf32> to vector<16x128xbf16>
      %c0_25 = arith.constant 0 : index
      %c0_26 = arith.constant 0 : index
      %44 = vector.load %arg8[%c0_25, %c0_26] : memref<16x128xbf16, #tpu.memory_space<vmem>>, vector<16x128xbf16>
      tpu.vector_store %arg8[%c0_25, %c0_26], %43 {strides = array<i32>} : memref<16x128xbf16, #tpu.memory_space<vmem>>, vector<16x128xbf16>,
    } else {
    }
    return
  }
  func.func @transform_0(%arg0: i32, %arg1: i32) -> (i32, i32) {
    %c0_i32 = arith.constant 0 : i32
    return %arg0, %arg1 : i32, i32
  }
  func.func @transform_1(%arg0: i32, %arg1: i32) -> (i32, i32) {
    %c0_i32 = arith.constant 0 : i32
    %c0_i32_0 = arith.constant 0 : i32
    return %arg1, %c0_i32 : i32, i32
  }
  func.func @transform_2(%arg0: i32, %arg1: i32) -> (i32, i32) {
    %c0_i32 = arith.constant 0 : i32
    %c0_i32_0 = arith.constant 0 : i32
    %c0_i32_1 = arith.constant 0 : i32
    return %c0_i32, %c0_i32_0 : i32, i32
  }
  func.func @transform_3(%arg0: i32, %arg1: i32) -> (i32, i32) {
    %c0_i32 = arith.constant 0 : i32
    %c0_i32_0 = arith.constant 0 : i32
    return %arg0, %c0_i32 : i32, i32
  }
  func.func @transform_4(%arg0: i32, %arg1: i32) -> (i32, i32) {
    %c0_i32 = arith.constant 0 : i32
    %c0_i32_0 = arith.constant 0 : i32
    %c0_i32_1 = arith.constant 0 : i32
    return %c0_i32, %c0_i32_0 : i32, i32
  }
  func.func @transform_5(%arg0: i32, %arg1: i32) -> (i32, i32) {
    %c0_i32 = arith.constant 0 : i32
    %c0_i32_0 = arith.constant 0 : i32
    %c0_i32_1 = arith.constant 0 : i32
    return %c0_i32, %c0_i32_0 : i32, i32
  }
  func.func @transform_6(%arg0: i32, %arg1: i32) -> (i32, i32) {
    %c0_i32 = arith.constant 0 : i32
    %c0_i32_0 = arith.constant 0 : i32
    return %arg0, %c0_i32 : i32, i32
  }
}

module attributes {stable_mosaic.version = 11 : i64} {
  func.func @_linear_kernel(%arg0: i32, %arg1: i32, %arg2: i32, %arg3: memref<16x128xbf16, #tpu.memory_space<vmem>>, %arg4: memref<128x384xbf16, #tpu.memory_space<vmem>>, %arg5: memref<1x384xf32, #tpu.memory_space<vmem>>, %arg6: memref<16x384xbf16, #tpu.memory_space<vmem>>, %arg7: memref<16x384xf32, #tpu.memory_space<vmem>>) attributes {dimension_semantics = [#tpu.dimension_semantics<parallel>, #tpu.dimension_semantics<parallel>, #tpu.dimension_semantics<arbitrary>], iteration_bounds = array<i64: 1, 1, 1>, scalar_prefetch = 0 : i64, scratch_operands = 1 : i64, tpu.core_type = #tpu.core_type<tc>, window_params = [{transform_indices = @transform_0, window_bounds = array<i64: 16, 128>}, {transform_indices = @transform_1, window_bounds = array<i64: 128, 384>}, {transform_indices = @transform_2, window_bounds = array<i64: 1, 384>}, {transform_indices = @transform_3, window_bounds = array<i64: 16, 384>}]} {
    %c0_i32 = arith.constant 0 : i32
    %0 = arith.cmpi eq, %arg2, %c0_i32 : i32
    %1 = arith.extui %0 : i1 to i32
    %c0_i32_0 = arith.constant 0 : i32
    %2 = arith.cmpi ne, %1, %c0_i32_0 : i32
    scf.if %2 {
      %cst_10 = arith.constant 0.000000e+00 : f32
      %12 = vector.broadcast %cst_10 : f32 to vector<16x384xf32>
      %c0_11 = arith.constant 0 : index
      %c0_12 = arith.constant 0 : index
      %13 = vector.load %arg7[%c0_11, %c0_12] : memref<16x384xf32, #tpu.memory_space<vmem>>, vector<16x384xf32>
      tpu.vector_store %arg7[%c0_11, %c0_12], %12 {strides = array<i32>} : memref<16x384xf32, #tpu.memory_space<vmem>>, vector<16x384xf32>,
    } else {
    }
    %c0 = arith.constant 0 : index
    %c0_1 = arith.constant 0 : index
    %3 = vector.load %arg7[%c0, %c0_1] : memref<16x384xf32, #tpu.memory_space<vmem>>, vector<16x384xf32>
    %c0_2 = arith.constant 0 : index
    %c0_3 = arith.constant 0 : index
    %4 = vector.load %arg3[%c0_2, %c0_3] : memref<16x128xbf16, #tpu.memory_space<vmem>>, vector<16x128xbf16>
    %c0_4 = arith.constant 0 : index
    %c0_5 = arith.constant 0 : index
    %5 = vector.load %arg4[%c0_4, %c0_5] : memref<128x384xbf16, #tpu.memory_space<vmem>>, vector<128x384xbf16>
    %cst = arith.constant dense<0.000000e+00> : vector<16x384xf32>
    %6 = tpu.matmul %4, %5, %cst {dimension_numbers = #tpu.dot_dimension_numbers<[1], [0], [0], [1], [0, 0, 1, 1], [], []>} : vector<16x128xbf16>, vector<128x384xbf16>, vector<16x384xf32> -> vector<16x384xf32>
    %7 = arith.addf %3, %6 : vector<16x384xf32>
    %c0_6 = arith.constant 0 : index
    %c0_7 = arith.constant 0 : index
    %8 = vector.load %arg7[%c0_6, %c0_7] : memref<16x384xf32, #tpu.memory_space<vmem>>, vector<16x384xf32>
    tpu.vector_store %arg7[%c0_6, %c0_7], %7 {strides = array<i32>} : memref<16x384xf32, #tpu.memory_space<vmem>>, vector<16x384xf32>,
    %c0_i32_8 = arith.constant 0 : i32
    %9 = arith.cmpi eq, %arg2, %c0_i32_8 : i32
    %10 = arith.extui %9 : i1 to i32
    %c0_i32_9 = arith.constant 0 : i32
    %11 = arith.cmpi ne, %10, %c0_i32_9 : i32
    scf.if %11 {
      %c0_10 = arith.constant 0 : index
      %c0_11 = arith.constant 0 : index
      %12 = vector.load %arg7[%c0_10, %c0_11] : memref<16x384xf32, #tpu.memory_space<vmem>>, vector<16x384xf32>
      %c0_12 = arith.constant 0 : index
      %c0_13 = arith.constant 0 : index
      %13 = vector.load %arg5[%c0_12, %c0_13] : memref<1x384xf32, #tpu.memory_space<vmem>>, vector<1x384xf32>
      %14 = vector.broadcast %13 : vector<1x384xf32> to vector<16x384xf32>
      %15 = arith.addf %12, %14 : vector<16x384xf32>
      %16 = arith.truncf %15 : vector<16x384xf32> to vector<16x384xbf16>
      %c0_14 = arith.constant 0 : index
      %c0_15 = arith.constant 0 : index
      %17 = vector.load %arg6[%c0_14, %c0_15] : memref<16x384xbf16, #tpu.memory_space<vmem>>, vector<16x384xbf16>
      tpu.vector_store %arg6[%c0_14, %c0_15], %16 {strides = array<i32>} : memref<16x384xbf16, #tpu.memory_space<vmem>>, vector<16x384xbf16>,
    } else {
    }
    return
  }
  func.func @transform_0(%arg0: i32, %arg1: i32, %arg2: i32) -> (i32, i32) {
    %c0_i32 = arith.constant 0 : i32
    return %arg0, %arg2 : i32, i32
  }
  func.func @transform_1(%arg0: i32, %arg1: i32, %arg2: i32) -> (i32, i32) {
    %c0_i32 = arith.constant 0 : i32
    return %arg2, %arg1 : i32, i32
  }
  func.func @transform_2(%arg0: i32, %arg1: i32, %arg2: i32) -> (i32, i32) {
    %c0_i32 = arith.constant 0 : i32
    %c0_i32_0 = arith.constant 0 : i32
    return %c0_i32, %arg1 : i32, i32
  }
  func.func @transform_3(%arg0: i32, %arg1: i32, %arg2: i32) -> (i32, i32) {
    %c0_i32 = arith.constant 0 : i32
    return %arg0, %arg1 : i32, i32
  }
}

module attributes {stable_mosaic.version = 11 : i64} {
  func.func @_ln_mask_kernel(%arg0: i32, %arg1: memref<16x128xbf16, #tpu.memory_space<vmem>>, %arg2: memref<16x1xf32, #tpu.memory_space<vmem>>, %arg3: memref<1x128xf32, #tpu.memory_space<vmem>>, %arg4: memref<1x128xf32, #tpu.memory_space<vmem>>, %arg5: memref<16x128xbf16, #tpu.memory_space<vmem>>) attributes {dimension_semantics = [#tpu.dimension_semantics<parallel>], iteration_bounds = array<i64: 1>, scalar_prefetch = 0 : i64, scratch_operands = 0 : i64, tpu.core_type = #tpu.core_type<tc>, window_params = [{transform_indices = @transform_0, window_bounds = array<i64: 16, 128>}, {transform_indices = @transform_1, window_bounds = array<i64: 16, 1>}, {pipeline_mode = #tpu.pipeline_mode<synchronous>, transform_indices = @transform_2, window_bounds = array<i64: 1, 128>}, {pipeline_mode = #tpu.pipeline_mode<synchronous>, transform_indices = @transform_3, window_bounds = array<i64: 1, 128>}, {transform_indices = @transform_4, window_bounds = array<i64: 16, 128>}]} {
    %c0 = arith.constant 0 : index
    %c0_0 = arith.constant 0 : index
    %0 = vector.load %arg1[%c0, %c0_0] : memref<16x128xbf16, #tpu.memory_space<vmem>>, vector<16x128xbf16>
    %1 = arith.extf %0 : vector<16x128xbf16> to vector<16x128xf32>
    %cst = arith.constant dense<0.000000e+00> : vector<16xf32>
    %2 = vector.multi_reduction <add>, %1, %cst [1] : vector<16x128xf32> to vector<16xf32>
    %3 = vector.shape_cast %2 : vector<16xf32> to vector<16x1xf32>
    %cst_1 = arith.constant 1.280000e+02 : f32
    %4 = vector.broadcast %cst_1 : f32 to vector<16x1xf32>
    %5 = arith.divf %3, %4 : vector<16x1xf32>
    %6 = vector.broadcast %5 : vector<16x1xf32> to vector<16x128xf32>
    %7 = arith.subf %1, %6 : vector<16x128xf32>
    %8 = arith.mulf %7, %7 : vector<16x128xf32>
    %cst_2 = arith.constant dense<0.000000e+00> : vector<16xf32>
    %9 = vector.multi_reduction <add>, %8, %cst_2 [1] : vector<16x128xf32> to vector<16xf32>
    %10 = vector.shape_cast %9 : vector<16xf32> to vector<16x1xf32>
    %cst_3 = arith.constant 1.280000e+02 : f32
    %11 = vector.broadcast %cst_3 : f32 to vector<16x1xf32>
    %12 = arith.divf %10, %11 : vector<16x1xf32>
    %13 = vector.broadcast %5 : vector<16x1xf32> to vector<16x128xf32>
    %14 = arith.subf %1, %13 : vector<16x128xf32>
    %cst_4 = arith.constant 1.000000e-07 : f32
    %15 = vector.broadcast %cst_4 : f32 to vector<16x1xf32>
    %16 = arith.addf %12, %15 : vector<16x1xf32>
    %17 = math.rsqrt %16 : vector<16x1xf32>
    %18 = vector.broadcast %17 : vector<16x1xf32> to vector<16x128xf32>
    %19 = arith.mulf %14, %18 : vector<16x128xf32>
    %c0_5 = arith.constant 0 : index
    %c0_6 = arith.constant 0 : index
    %20 = vector.load %arg3[%c0_5, %c0_6] : memref<1x128xf32, #tpu.memory_space<vmem>>, vector<1x128xf32>
    %21 = vector.broadcast %20 : vector<1x128xf32> to vector<16x128xf32>
    %22 = arith.mulf %19, %21 : vector<16x128xf32>
    %c0_7 = arith.constant 0 : index
    %c0_8 = arith.constant 0 : index
    %23 = vector.load %arg4[%c0_7, %c0_8] : memref<1x128xf32, #tpu.memory_space<vmem>>, vector<1x128xf32>
    %24 = vector.broadcast %23 : vector<1x128xf32> to vector<16x128xf32>
    %25 = arith.addf %22, %24 : vector<16x128xf32>
    %c0_9 = arith.constant 0 : index
    %c0_10 = arith.constant 0 : index
    %26 = vector.load %arg2[%c0_9, %c0_10] : memref<16x1xf32, #tpu.memory_space<vmem>>, vector<16x1xf32>
    %27 = vector.broadcast %26 : vector<16x1xf32> to vector<16x128xf32>
    %28 = arith.mulf %25, %27 : vector<16x128xf32>
    %29 = arith.truncf %28 : vector<16x128xf32> to vector<16x128xbf16>
    %c0_11 = arith.constant 0 : index
    %c0_12 = arith.constant 0 : index
    %30 = vector.load %arg5[%c0_11, %c0_12] : memref<16x128xbf16, #tpu.memory_space<vmem>>, vector<16x128xbf16>
    tpu.vector_store %arg5[%c0_11, %c0_12], %29 {strides = array<i32>} : memref<16x128xbf16, #tpu.memory_space<vmem>>, vector<16x128xbf16>,
    return
  }
  func.func @transform_0(%arg0: i32) -> (i32, i32) {
    %c0_i32 = arith.constant 0 : i32
    %c0_i32_0 = arith.constant 0 : i32
    return %arg0, %c0_i32 : i32, i32
  }
  func.func @transform_1(%arg0: i32) -> (i32, i32) {
    %c0_i32 = arith.constant 0 : i32
    %c0_i32_0 = arith.constant 0 : i32
    return %arg0, %c0_i32 : i32, i32
  }
  func.func @transform_2(%arg0: i32) -> (i32, i32) {
    %c0_i32 = arith.constant 0 : i32
    %c0_i32_0 = arith.constant 0 : i32
    %c0_i32_1 = arith.constant 0 : i32
    return %c0_i32, %c0_i32_0 : i32, i32
  }
  func.func @transform_3(%arg0: i32) -> (i32, i32) {
    %c0_i32 = arith.constant 0 : i32
    %c0_i32_0 = arith.constant 0 : i32
    %c0_i32_1 = arith.constant 0 : i32
    return %c0_i32, %c0_i32_0 : i32, i32
  }
  func.func @transform_4(%arg0: i32) -> (i32, i32) {
    %c0_i32 = arith.constant 0 : i32
    %c0_i32_0 = arith.constant 0 : i32
    return %arg0, %c0_i32 : i32, i32
  }
}

module attributes {stable_mosaic.version = 11 : i64} {
  func.func @_linear_kernel(%arg0: i32, %arg1: i32, %arg2: i32, %arg3: memref<16x128xbf16, #tpu.memory_space<vmem>>, %arg4: memref<128x256xbf16, #tpu.memory_space<vmem>>, %arg5: memref<1x256xf32, #tpu.memory_space<vmem>>, %arg6: memref<16x256xbf16, #tpu.memory_space<vmem>>, %arg7: memref<16x256xf32, #tpu.memory_space<vmem>>) attributes {dimension_semantics = [#tpu.dimension_semantics<parallel>, #tpu.dimension_semantics<parallel>, #tpu.dimension_semantics<arbitrary>], iteration_bounds = array<i64: 1, 1, 1>, scalar_prefetch = 0 : i64, scratch_operands = 1 : i64, tpu.core_type = #tpu.core_type<tc>, window_params = [{transform_indices = @transform_0, window_bounds = array<i64: 16, 128>}, {transform_indices = @transform_1, window_bounds = array<i64: 128, 256>}, {transform_indices = @transform_2, window_bounds = array<i64: 1, 256>}, {transform_indices = @transform_3, window_bounds = array<i64: 16, 256>}]} {
    %c0_i32 = arith.constant 0 : i32
    %0 = arith.cmpi eq, %arg2, %c0_i32 : i32
    %1 = arith.extui %0 : i1 to i32
    %c0_i32_0 = arith.constant 0 : i32
    %2 = arith.cmpi ne, %1, %c0_i32_0 : i32
    scf.if %2 {
      %cst_10 = arith.constant 0.000000e+00 : f32
      %12 = vector.broadcast %cst_10 : f32 to vector<16x256xf32>
      %c0_11 = arith.constant 0 : index
      %c0_12 = arith.constant 0 : index
      %13 = vector.load %arg7[%c0_11, %c0_12] : memref<16x256xf32, #tpu.memory_space<vmem>>, vector<16x256xf32>
      tpu.vector_store %arg7[%c0_11, %c0_12], %12 {strides = array<i32>} : memref<16x256xf32, #tpu.memory_space<vmem>>, vector<16x256xf32>,
    } else {
    }
    %c0 = arith.constant 0 : index
    %c0_1 = arith.constant 0 : index
    %3 = vector.load %arg7[%c0, %c0_1] : memref<16x256xf32, #tpu.memory_space<vmem>>, vector<16x256xf32>
    %c0_2 = arith.constant 0 : index
    %c0_3 = arith.constant 0 : index
    %4 = vector.load %arg3[%c0_2, %c0_3] : memref<16x128xbf16, #tpu.memory_space<vmem>>, vector<16x128xbf16>
    %c0_4 = arith.constant 0 : index
    %c0_5 = arith.constant 0 : index
    %5 = vector.load %arg4[%c0_4, %c0_5] : memref<128x256xbf16, #tpu.memory_space<vmem>>, vector<128x256xbf16>
    %cst = arith.constant dense<0.000000e+00> : vector<16x256xf32>
    %6 = tpu.matmul %4, %5, %cst {dimension_numbers = #tpu.dot_dimension_numbers<[1], [0], [0], [1], [0, 0, 1, 1], [], []>} : vector<16x128xbf16>, vector<128x256xbf16>, vector<16x256xf32> -> vector<16x256xf32>
    %7 = arith.addf %3, %6 : vector<16x256xf32>
    %c0_6 = arith.constant 0 : index
    %c0_7 = arith.constant 0 : index
    %8 = vector.load %arg7[%c0_6, %c0_7] : memref<16x256xf32, #tpu.memory_space<vmem>>, vector<16x256xf32>
    tpu.vector_store %arg7[%c0_6, %c0_7], %7 {strides = array<i32>} : memref<16x256xf32, #tpu.memory_space<vmem>>, vector<16x256xf32>,
    %c0_i32_8 = arith.constant 0 : i32
    %9 = arith.cmpi eq, %arg2, %c0_i32_8 : i32
    %10 = arith.extui %9 : i1 to i32
    %c0_i32_9 = arith.constant 0 : i32
    %11 = arith.cmpi ne, %10, %c0_i32_9 : i32
    scf.if %11 {
      %c0_10 = arith.constant 0 : index
      %c0_11 = arith.constant 0 : index
      %12 = vector.load %arg7[%c0_10, %c0_11] : memref<16x256xf32, #tpu.memory_space<vmem>>, vector<16x256xf32>
      %c0_12 = arith.constant 0 : index
      %c0_13 = arith.constant 0 : index
      %13 = vector.load %arg5[%c0_12, %c0_13] : memref<1x256xf32, #tpu.memory_space<vmem>>, vector<1x256xf32>
      %14 = vector.broadcast %13 : vector<1x256xf32> to vector<16x256xf32>
      %15 = arith.addf %12, %14 : vector<16x256xf32>
      %16 = arith.mulf %15, %15 : vector<16x256xf32>
      %17 = arith.mulf %15, %16 : vector<16x256xf32>
      %cst_14 = arith.constant 4.471500e-02 : f32
      %18 = vector.broadcast %cst_14 : f32 to vector<16x256xf32>
      %19 = arith.mulf %18, %17 : vector<16x256xf32>
      %20 = arith.addf %15, %19 : vector<16x256xf32>
      %cst_15 = arith.constant 0.797884583 : f32
      %21 = vector.broadcast %cst_15 : f32 to vector<16x256xf32>
      %22 = arith.mulf %21, %20 : vector<16x256xf32>
      %23 = math.tanh %22 : vector<16x256xf32>
      %cst_16 = arith.constant 1.000000e+00 : f32
      %24 = vector.broadcast %cst_16 : f32 to vector<16x256xf32>
      %25 = arith.addf %24, %23 : vector<16x256xf32>
      %cst_17 = arith.constant 5.000000e-01 : f32
      %26 = vector.broadcast %cst_17 : f32 to vector<16x256xf32>
      %27 = arith.mulf %26, %25 : vector<16x256xf32>
      %28 = arith.mulf %15, %27 : vector<16x256xf32>
      %29 = arith.truncf %28 : vector<16x256xf32> to vector<16x256xbf16>
      %c0_18 = arith.constant 0 : index
      %c0_19 = arith.constant 0 : index
      %30 = vector.load %arg6[%c0_18, %c0_19] : memref<16x256xbf16, #tpu.memory_space<vmem>>, vector<16x256xbf16>
      tpu.vector_store %arg6[%c0_18, %c0_19], %29 {strides = array<i32>} : memref<16x256xbf16, #tpu.memory_space<vmem>>, vector<16x256xbf16>,
    } else {
    }
    return
  }
  func.func @transform_0(%arg0: i32, %arg1: i32, %arg2: i32) -> (i32, i32) {
    %c0_i32 = arith.constant 0 : i32
    return %arg0, %arg2 : i32, i32
  }
  func.func @transform_1(%arg0: i32, %arg1: i32, %arg2: i32) -> (i32, i32) {
    %c0_i32 = arith.constant 0 : i32
    return %arg2, %arg1 : i32, i32
  }
  func.func @transform_2(%arg0: i32, %arg1: i32, %arg2: i32) -> (i32, i32) {
    %c0_i32 = arith.constant 0 : i32
    %c0_i32_0 = arith.constant 0 : i32
    return %c0_i32, %arg1 : i32, i32
  }
  func.func @transform_3(%arg0: i32, %arg1: i32, %arg2: i32) -> (i32, i32) {
    %c0_i32 = arith.constant 0 : i32
    return %arg0, %arg1 : i32, i32
  }
}

module attributes {stable_mosaic.version = 11 : i64} {
  func.func @_linear_res_ln_kernel(%arg0: i32, %arg1: i32, %arg2: memref<16x256xbf16, #tpu.memory_space<vmem>>, %arg3: memref<256x128xbf16, #tpu.memory_space<vmem>>, %arg4: memref<1x128xf32, #tpu.memory_space<vmem>>, %arg5: memref<16x128xbf16, #tpu.memory_space<vmem>>, %arg6: memref<1x128xf32, #tpu.memory_space<vmem>>, %arg7: memref<1x128xf32, #tpu.memory_space<vmem>>, %arg8: memref<16x128xbf16, #tpu.memory_space<vmem>>, %arg9: memref<16x128xf32, #tpu.memory_space<vmem>>) attributes {dimension_semantics = [#tpu.dimension_semantics<parallel>, #tpu.dimension_semantics<arbitrary>], iteration_bounds = array<i64: 1, 1>, scalar_prefetch = 0 : i64, scratch_operands = 1 : i64, tpu.core_type = #tpu.core_type<tc>, window_params = [{transform_indices = @transform_0, window_bounds = array<i64: 16, 256>}, {transform_indices = @transform_1, window_bounds = array<i64: 256, 128>}, {pipeline_mode = #tpu.pipeline_mode<synchronous>, transform_indices = @transform_2, window_bounds = array<i64: 1, 128>}, {transform_indices = @transform_3, window_bounds = array<i64: 16, 128>}, {pipeline_mode = #tpu.pipeline_mode<synchronous>, transform_indices = @transform_4, window_bounds = array<i64: 1, 128>}, {pipeline_mode = #tpu.pipeline_mode<synchronous>, transform_indices = @transform_5, window_bounds = array<i64: 1, 128>}, {transform_indices = @transform_6, window_bounds = array<i64: 16, 128>}]} {
    %c0_i32 = arith.constant 0 : i32
    %0 = arith.cmpi eq, %arg1, %c0_i32 : i32
    %1 = arith.extui %0 : i1 to i32
    %c0_i32_0 = arith.constant 0 : i32
    %2 = arith.cmpi ne, %1, %c0_i32_0 : i32
    scf.if %2 {
      %cst_10 = arith.constant 0.000000e+00 : f32
      %12 = vector.broadcast %cst_10 : f32 to vector<16x128xf32>
      %c0_11 = arith.constant 0 : index
      %c0_12 = arith.constant 0 : index
      %13 = vector.load %arg9[%c0_11, %c0_12] : memref<16x128xf32, #tpu.memory_space<vmem>>, vector<16x128xf32>
      tpu.vector_store %arg9[%c0_11, %c0_12], %12 {strides = array<i32>} : memref<16x128xf32, #tpu.memory_space<vmem>>, vector<16x128xf32>,
    } else {
    }
    %c0 = arith.constant 0 : index
    %c0_1 = arith.constant 0 : index
    %3 = vector.load %arg9[%c0, %c0_1] : memref<16x128xf32, #tpu.memory_space<vmem>>, vector<16x128xf32>
    %c0_2 = arith.constant 0 : index
    %c0_3 = arith.constant 0 : index
    %4 = vector.load %arg2[%c0_2, %c0_3] : memref<16x256xbf16, #tpu.memory_space<vmem>>, vector<16x256xbf16>
    %c0_4 = arith.constant 0 : index
    %c0_5 = arith.constant 0 : index
    %5 = vector.load %arg3[%c0_4, %c0_5] : memref<256x128xbf16, #tpu.memory_space<vmem>>, vector<256x128xbf16>
    %cst = arith.constant dense<0.000000e+00> : vector<16x128xf32>
    %6 = tpu.matmul %4, %5, %cst {dimension_numbers = #tpu.dot_dimension_numbers<[1], [0], [0], [1], [0, 0, 1, 1], [], []>} : vector<16x256xbf16>, vector<256x128xbf16>, vector<16x128xf32> -> vector<16x128xf32>
    %7 = arith.addf %3, %6 : vector<16x128xf32>
    %c0_6 = arith.constant 0 : index
    %c0_7 = arith.constant 0 : index
    %8 = vector.load %arg9[%c0_6, %c0_7] : memref<16x128xf32, #tpu.memory_space<vmem>>, vector<16x128xf32>
    tpu.vector_store %arg9[%c0_6, %c0_7], %7 {strides = array<i32>} : memref<16x128xf32, #tpu.memory_space<vmem>>, vector<16x128xf32>,
    %c0_i32_8 = arith.constant 0 : i32
    %9 = arith.cmpi eq, %arg1, %c0_i32_8 : i32
    %10 = arith.extui %9 : i1 to i32
    %c0_i32_9 = arith.constant 0 : i32
    %11 = arith.cmpi ne, %10, %c0_i32_9 : i32
    scf.if %11 {
      %c0_10 = arith.constant 0 : index
      %c0_11 = arith.constant 0 : index
      %12 = vector.load %arg9[%c0_10, %c0_11] : memref<16x128xf32, #tpu.memory_space<vmem>>, vector<16x128xf32>
      %c0_12 = arith.constant 0 : index
      %c0_13 = arith.constant 0 : index
      %13 = vector.load %arg4[%c0_12, %c0_13] : memref<1x128xf32, #tpu.memory_space<vmem>>, vector<1x128xf32>
      %14 = vector.broadcast %13 : vector<1x128xf32> to vector<16x128xf32>
      %15 = arith.addf %12, %14 : vector<16x128xf32>
      %c0_14 = arith.constant 0 : index
      %c0_15 = arith.constant 0 : index
      %16 = vector.load %arg5[%c0_14, %c0_15] : memref<16x128xbf16, #tpu.memory_space<vmem>>, vector<16x128xbf16>
      %17 = arith.extf %16 : vector<16x128xbf16> to vector<16x128xf32>
      %18 = arith.addf %15, %17 : vector<16x128xf32>
      %cst_16 = arith.constant dense<0.000000e+00> : vector<16xf32>
      %19 = vector.multi_reduction <add>, %18, %cst_16 [1] : vector<16x128xf32> to vector<16xf32>
      %20 = vector.shape_cast %19 : vector<16xf32> to vector<16x1xf32>
      %cst_17 = arith.constant 1.280000e+02 : f32
      %21 = vector.broadcast %cst_17 : f32 to vector<16x1xf32>
      %22 = arith.divf %20, %21 : vector<16x1xf32>
      %23 = vector.broadcast %22 : vector<16x1xf32> to vector<16x128xf32>
      %24 = arith.subf %18, %23 : vector<16x128xf32>
      %25 = arith.mulf %24, %24 : vector<16x128xf32>
      %cst_18 = arith.constant dense<0.000000e+00> : vector<16xf32>
      %26 = vector.multi_reduction <add>, %25, %cst_18 [1] : vector<16x128xf32> to vector<16xf32>
      %27 = vector.shape_cast %26 : vector<16xf32> to vector<16x1xf32>
      %cst_19 = arith.constant 1.280000e+02 : f32
      %28 = vector.broadcast %cst_19 : f32 to vector<16x1xf32>
      %29 = arith.divf %27, %28 : vector<16x1xf32>
      %30 = vector.broadcast %22 : vector<16x1xf32> to vector<16x128xf32>
      %31 = arith.subf %18, %30 : vector<16x128xf32>
      %cst_20 = arith.constant 1.000000e-07 : f32
      %32 = vector.broadcast %cst_20 : f32 to vector<16x1xf32>
      %33 = arith.addf %29, %32 : vector<16x1xf32>
      %34 = math.rsqrt %33 : vector<16x1xf32>
      %35 = vector.broadcast %34 : vector<16x1xf32> to vector<16x128xf32>
      %36 = arith.mulf %31, %35 : vector<16x128xf32>
      %c0_21 = arith.constant 0 : index
      %c0_22 = arith.constant 0 : index
      %37 = vector.load %arg6[%c0_21, %c0_22] : memref<1x128xf32, #tpu.memory_space<vmem>>, vector<1x128xf32>
      %38 = vector.broadcast %37 : vector<1x128xf32> to vector<16x128xf32>
      %39 = arith.mulf %36, %38 : vector<16x128xf32>
      %c0_23 = arith.constant 0 : index
      %c0_24 = arith.constant 0 : index
      %40 = vector.load %arg7[%c0_23, %c0_24] : memref<1x128xf32, #tpu.memory_space<vmem>>, vector<1x128xf32>
      %41 = vector.broadcast %40 : vector<1x128xf32> to vector<16x128xf32>
      %42 = arith.addf %39, %41 : vector<16x128xf32>
      %43 = arith.truncf %42 : vector<16x128xf32> to vector<16x128xbf16>
      %c0_25 = arith.constant 0 : index
      %c0_26 = arith.constant 0 : index
      %44 = vector.load %arg8[%c0_25, %c0_26] : memref<16x128xbf16, #tpu.memory_space<vmem>>, vector<16x128xbf16>
      tpu.vector_store %arg8[%c0_25, %c0_26], %43 {strides = array<i32>} : memref<16x128xbf16, #tpu.memory_space<vmem>>, vector<16x128xbf16>,
    } else {
    }
    return
  }
  func.func @transform_0(%arg0: i32, %arg1: i32) -> (i32, i32) {
    %c0_i32 = arith.constant 0 : i32
    return %arg0, %arg1 : i32, i32
  }
  func.func @transform_1(%arg0: i32, %arg1: i32) -> (i32, i32) {
    %c0_i32 = arith.constant 0 : i32
    %c0_i32_0 = arith.constant 0 : i32
    return %arg1, %c0_i32 : i32, i32
  }
  func.func @transform_2(%arg0: i32, %arg1: i32) -> (i32, i32) {
    %c0_i32 = arith.constant 0 : i32
    %c0_i32_0 = arith.constant 0 : i32
    %c0_i32_1 = arith.constant 0 : i32
    return %c0_i32, %c0_i32_0 : i32, i32
  }
  func.func @transform_3(%arg0: i32, %arg1: i32) -> (i32, i32) {
    %c0_i32 = arith.constant 0 : i32
    %c0_i32_0 = arith.constant 0 : i32
    return %arg0, %c0_i32 : i32, i32
  }
  func.func @transform_4(%arg0: i32, %arg1: i32) -> (i32, i32) {
    %c0_i32 = arith.constant 0 : i32
    %c0_i32_0 = arith.constant 0 : i32
    %c0_i32_1 = arith.constant 0 : i32
    return %c0_i32, %c0_i32_0 : i32, i32
  }
  func.func @transform_5(%arg0: i32, %arg1: i32) -> (i32, i32) {
    %c0_i32 = arith.constant 0 : i32
    %c0_i32_0 = arith.constant 0 : i32
    %c0_i32_1 = arith.constant 0 : i32
    return %c0_i32, %c0_i32_0 : i32, i32
  }
  func.func @transform_6(%arg0: i32, %arg1: i32) -> (i32, i32) {
    %c0_i32 = arith.constant 0 : i32
    %c0_i32_0 = arith.constant 0 : i32
    return %arg0, %c0_i32 : i32, i32
  }
}

</mosaic_0001>

<bundles_post_ra>
// kernel: deberta_classifier_forward.11
= control target key start
LH: loop header
LB: loop body
LE: loop exit
PB: predicated region body
PF: predicated region fallthrough
CT: control target
= control target key end

     0   :  { %v112_v3 = vmov 0   ;;  %s156_s0 = inlined_call_operand.vmem [shape: bf16[16,128], index: 0, kind: input, shape index: {}]   ;;  %s157_s1 = inlined_call_operand.vmem [shape: f32[16,1], index: 1, kind: input, shape index: {}]   ;;  %s158_s2 = inlined_call_operand.vmem [shape: f32[1,128], index: 2, kind: input, shape index: {}]   ;;  %s159_s3 = inlined_call_operand.vmem [shape: f32[1,128], index: 3, kind: input, shape index: {}]   ;;  %s160_s4 = inlined_call_operand.vmem [shape: bf16[16,128], index: 4, kind: output, shape index: {}]  }
   0x1   :  { %v97_v0 = vld [vmem:[%s156_s0] sm:$0xff]   ;;  %106 = vset.pattern.permute.xlu0 %v112_v3  ;;  %107 = vset.pattern.permute.xlu1 %v112_v3  ;;  %v63_v13 = vld [vmem:[%s157_s1 + $0x8] sm:$0xff] }
   0x2   :  { %v98_v1 = vunpack.c.l.bf16 %v97_v0  ;;  %v99_v2 = vunpack.c.h.bf16 %v97_v0  ;;  %v62_v4 = vld [vmem:[%s157_s1] sm:$0xff] }
   0x3   :  { %v90_v21 = vld [vmem:[%s158_s2] ss:$0 sm:$0xff] }
   0x4   :  { %21 = vadd.xlane.f32.xlu0 %v98_v1  ;;  %v91_v25 = vld [vmem:[%s159_s3] ss:$0 sm:$0xff] }
   0x8   :  { %23 = vadd.xlane.f32.xlu0 %v99_v2 }
  0x1e   :  { %66 = vperm.xlu0 %106, %v62_v4  }
  0x8d   :  { %v22_v5 = vpop.xlane.xlu0 %21 }
  0x8e   :  { %v26_v6 = vmul.f32 0.0078125, %v22_v5 }
  0x90   :  { %v28_v7 = vsub.f32 %v98_v1, %v26_v6 }
  0x91   :  { %v24_v8 = vpop.xlane.xlu0 %23 }
  0x92   :  { %v27_v9 = vmul.f32 0.0078125, %v24_v8  ;;  %v30_v10 = vmul.f32 %v28_v7, %v28_v7 }
  0x94   :  { %v29_v11 = vsub.f32 %v99_v2, %v27_v9  ;;  %32 = vadd.xlane.f32.xlu1 %v30_v10 }
  0x96   :  { %v31_v12 = vmul.f32 %v29_v11, %v29_v11 }
  0x98   :  { %34 = vadd.xlane.f32.xlu1 %v31_v12 }
  0x99   :  { %v67_v29 = vpop.permute.xlu0 %66 }
  0xa9   :  { %71 = vperm.xlu1 %107, %v63_v13  }
 0x11d   :  { %v33_v14 = vpop.xlane.xlu1 %32 }
 0x11e   :  { %v36_v15 = vmul.f32 0.0078125, %v33_v14 }
 0x120   :  { %v38_v16 = vadd.f32 1e-07, %v36_v15 }
 0x121   :  { %v35_v17 = vpop.xlane.xlu1 %34 }
 0x122   :  { %108 = vrsqrt.f32 %v38_v16  ;;  %v37_v18 = vmul.f32 0.0078125, %v35_v17 }
 0x124   :  { %v39_v19 = vadd.f32 1e-07, %v37_v18 }
 0x125   :  { %v72_v30 = vpop.permute.xlu1 %71 }
 0x126   :  { %110 = vrsqrt.f32 %v39_v19 }
 0x12f   :  { %v109_v20 = vpop.eup %108 }
 0x130   :  { %v42_v22 = vmul.f32 %v109_v20, %v28_v7 }
 0x132   :  { %v51_v23 = vmul.f32 %v90_v21, %v42_v22 }
 0x133   :  { %v111_v24 = vpop.eup %110 }
 0x134   :  { %v43_v26 = vmul.f32 %v111_v24, %v29_v11  ;;  %v60_v27 = vadd.f32 %v91_v25, %v51_v23 }
 0x136   :  { %v52_v28 = vmul.f32 %v90_v21, %v43_v26  ;;  %v74_v32 = vmul.f32 %v67_v29, %v60_v27 }
 0x138   :  { %v61_v31 = vadd.f32 %v91_v25, %v52_v28 }
 0x13a   :  { %v75_v33 = vmul.f32 %v72_v30, %v61_v31 }
 0x13c   :  { %v103_v34 = vpack.c.bf16 %v75_v33, %v74_v32 }
 0x13e   :  { %104 = vst [vmem:[%s160_s4] sm:$0xff] %v103_v34  }

// kernel: deberta_classifier_forward.14
= control target key start
LH: loop header
LB: loop body
LE: loop exit
PB: predicated region body
PF: predicated region fallthrough
CT: control target
= control target key end

     0   :  { %v293_v0 = vmov 0.0   ;;  %vm294_vm0 = vmmov 0   ;;  %s372_s1 = inlined_call_operand.vmem [shape: bf16[128,128], index: 1, kind: input, shape index: {}]   ;;  %s373_s0 = inlined_call_operand.vmem [shape: bf16[16,128], index: 0, kind: input, shape index: {}]   ;;  %s374_s3 = inlined_call_operand.vmem [shape: bf16[16,128], index: 3, kind: input, shape index: {}]   ;;  %s375_s2 = inlined_call_operand.vmem [shape: f32[1,128], index: 2, kind: input, shape index: {}]   ;;  %s376_s4 = inlined_call_operand.vmem [shape: f32[1,128], index: 4, kind: input, shape index: {}]   ;;  %s377_s5 = inlined_call_operand.vmem [shape: f32[1,128], index: 5, kind: input, shape index: {}]   ;;  %s378_s6 = inlined_call_operand.vmem [shape: bf16[16,128], index: 6, kind: output, shape index: {}]  }
   0x1   :  { %258 = vmatprep.subr.bf16.mxu0 %v293_v0  ;;  %v280_v1 = vld [vmem:[%s372_s1 + $0x38] sm:$0xff]   ;;  %274 = vmatprep.mubr.msk.bf16.mxu0 %vm294_vm0, %v293_v0  ;;  %v281_v2 = vld [vmem:[%s372_s1 + $0x30] sm:$0xff]   ;;  %v282_v3 = vld [vmem:[%s372_s1 + $0x28] sm:$0xff]  }
   0x2   :  { %259 = vmatpush3.bf16.msra.mxu0 %v280_v1  ;;  %v283_v4 = vld [vmem:[%s372_s1 + $0x20] sm:$0xff]   ;;  %v284_v5 = vld [vmem:[%s372_s1 + $0x18] sm:$0xff]   ;;  %v285_v6 = vld [vmem:[%s372_s1 + $0x10] sm:$0xff]  }
   0x3   :  { %260 = vmatprep.subr.bf16.mxu0 %v293_v0  ;;  %v286_v7 = vld [vmem:[%s372_s1 + $0x8] sm:$0xff]   ;;  %v287_v8 = vld [vmem:[%s372_s1] sm:$0xff]  }
   0x4   :  { %v288_v9 = vld [vmem:[%s373_s0] sm:$0xff]  }
   0x5   :  { %v241_v10 = vld [vmem:[%s374_s3] sm:$0xff]  }
   0x6   :  { %261 = vmatpush3.bf16.msra.mxu0 %v281_v2  ;;  %v233_v11 = vld [vmem:[%s375_s2] ss:$0 sm:$0xff]  ;;  %v242_v12 = vunpack.c.l.bf16 %v241_v10  ;;  %v243_v17 = vunpack.c.h.bf16 %v241_v10 }
   0x7   :  { %262 = vmatprep.subr.bf16.mxu0 %v293_v0  ;;  %v234_v38 = vld [vmem:[%s376_s4] ss:$0 sm:$0xff] }
   0x8   :  { %v235_v42 = vld [vmem:[%s377_s5] ss:$0 sm:$0xff] }
   0xa   :  { %263 = vmatpush3.bf16.msra.mxu0 %v282_v3 }
   0xb   :  { %264 = vmatprep.subr.bf16.mxu0 %v293_v0 }
   0xe   :  { %265 = vmatpush3.bf16.msra.mxu0 %v283_v4 }
   0xf   :  { %266 = vmatprep.subr.bf16.mxu0 %v293_v0 }
  0x12   :  { %267 = vmatpush3.bf16.msra.mxu0 %v284_v5 }
  0x13   :  { %268 = vmatprep.subr.bf16.mxu0 %v293_v0 }
  0x16   :  { %269 = vmatpush3.bf16.msra.mxu0 %v285_v6 }
  0x17   :  { %270 = vmatprep.subr.bf16.mxu0 %v293_v0 }
  0x1a   :  { %271 = vmatpush3.bf16.msra.mxu0 %v286_v7 }
  0x1b   :  { %272 = vmatprep.subr.bf16.mxu0 %v293_v0 }
  0x1e   :  { %273 = vmatpush3.bf16.msra.mxu0 %v287_v8 }
  0x21   :  { %275 = vmatmul.mubr.bf16.vlgmr.msra.gmra.mxu0 %v288_v9 }
  0xe1   :  { %v138_v13 = vpop.f32.mrf.mxu0 }
  0xe2   :  { %v161_v14 = vadd.f32 %v233_v11, %v138_v13 }
  0xe3   :  { %v276_v15 = vpop.f32.mrf.mxu0 }
  0xe4   :  { %v167_v16 = vadd.f32 %v242_v12, %v161_v14 }
  0xe5   :  { %v141_v18 = vpop.f32.mrf.mxu0 }
  0xe6   :  { %v162_v19 = vadd.f32 %v233_v11, %v141_v18  ;;  %169 = vadd.xlane.f32.xlu0 %v167_v16 }
  0xe7   :  { %v277_v20 = vpop.f32.mrf.mxu0 }
  0xe8   :  { %v168_v21 = vadd.f32 %v243_v17, %v162_v19 }
  0xea   :  { %171 = vadd.xlane.f32.xlu0 %v168_v21 }
 0x16f   :  { %v170_v22 = vpop.xlane.xlu0 %169 }
 0x170   :  { %v174_v23 = vmul.f32 0.0078125, %v170_v22 }
 0x172   :  { %v176_v24 = vsub.f32 %v167_v16, %v174_v23 }
 0x173   :  { %v172_v25 = vpop.xlane.xlu0 %171 }
 0x174   :  { %v175_v26 = vmul.f32 0.0078125, %v172_v25  ;;  %v178_v27 = vmul.f32 %v176_v24, %v176_v24 }
 0x176   :  { %v177_v28 = vsub.f32 %v168_v21, %v175_v26  ;;  %180 = vadd.xlane.f32.xlu1 %v178_v27 }
 0x178   :  { %v179_v29 = vmul.f32 %v177_v28, %v177_v28 }
 0x17a   :  { %182 = vadd.xlane.f32.xlu1 %v179_v29 }
 0x1ff   :  { %v181_v30 = vpop.xlane.xlu1 %180 }
 0x200   :  { %v184_v31 = vmul.f32 0.0078125, %v181_v30 }
 0x202   :  { %v186_v32 = vadd.f32 1e-07, %v184_v31 }
 0x203   :  { %v183_v33 = vpop.xlane.xlu1 %182 }
 0x204   :  { %289 = vrsqrt.f32 %v186_v32  ;;  %v185_v34 = vmul.f32 0.0078125, %v183_v33 }
 0x206   :  { %v187_v35 = vadd.f32 1e-07, %v185_v34 }
 0x208   :  { %291 = vrsqrt.f32 %v187_v35 }
 0x211   :  { %v290_v36 = vpop.eup %289 }
 0x212   :  { %v190_v37 = vmul.f32 %v290_v36, %v176_v24 }
 0x214   :  { %v199_v40 = vmul.f32 %v234_v38, %v190_v37 }
 0x215   :  { %v292_v39 = vpop.eup %291 }
 0x216   :  { %v191_v41 = vmul.f32 %v292_v39, %v177_v28  ;;  %v208_v44 = vadd.f32 %v235_v42, %v199_v40 }
 0x218   :  { %v200_v43 = vmul.f32 %v234_v38, %v191_v41 }
 0x21a   :  { %v209_v45 = vadd.f32 %v235_v42, %v200_v43 }
 0x21c   :  { %v247_v46 = vpack.c.bf16 %v209_v45, %v208_v44 }
 0x21e   :  { %248 = vst [vmem:[%s378_s6] sm:$0xff] %v247_v46  }

// kernel: deberta_classifier_forward.12
= control target key start
LH: loop header
LB: loop body
LE: loop exit
PB: predicated region body
PF: predicated region fallthrough
CT: control target
= control target key end

     0   :  { %v453_v0 = vmov 0.0   ;;  %vm454_vm0 = vmmov 0   ;;  %v455_v3 = vmov 0   ;;  %v306_v27 = vlaneseq  ;;  %s566_s1 = inlined_call_operand.vmem [shape: bf16[128,384], index: 1, kind: input, shape index: {}]   ;;  %s567_s0 = inlined_call_operand.vmem [shape: bf16[16,128], index: 0, kind: input, shape index: {}]   ;;  %s568_s2 = inlined_call_operand.vmem [shape: f32[1,384], index: 2, kind: input, shape index: {}]   ;;  %s569_s3 = inlined_call_operand.vmem [shape: bf16[16,384], index: 3, kind: output, shape index: {}]  }
   0x1   :  { %397 = vmatprep.subr.bf16.mxu1 %v453_v0  ;;  %v420_v1 = vld [vmem:[%s566_s1 + $0xac] ss:$12 sps:$4 sm:$0xff]   ;;  %413 = vmatprep.mubr.msk.bf16.mxu1 %vm454_vm0, %v453_v0  ;;  %v422_v2 = vld [vmem:[%s566_s1 + $0xb0] ss:$12 sps:$4 sm:$0xff]   ;;  %v423_v4 = vld [vmem:[%s566_s1 + $0xa8] ss:$12 sps:$4 sm:$0xff]  }
   0x2   :  { %231 = vmatprep.mubr.bf16.mxu0 %v455_v3  ;;  %199 = vmatprep.subr.bf16.mxu0 %v420_v1  ;;  %v424_v5 = vld [vmem:[%s566_s1 + $0x94] ss:$12 sps:$4 sm:$0xff]   ;;  %v426_v6 = vld [vmem:[%s566_s1 + $0x98] ss:$12 sps:$4 sm:$0xff]   ;;  %v427_v7 = vld [vmem:[%s566_s1 + $0x90] ss:$12 sps:$4 sm:$0xff]  }
   0x3   :  { %398 = vmatpush3.bf16.msra.mxu1 %v422_v2  ;;  %200 = vmatpush1.bf16.msra.mxu0 %v423_v4  ;;  %v428_v8 = vld [vmem:[%s566_s1 + $0x7c] ss:$12 sps:$4 sm:$0xff]   ;;  %v430_v9 = vld [vmem:[%s566_s1 + $0x80] ss:$12 sps:$4 sm:$0xff]   ;;  %v431_v10 = vld [vmem:[%s566_s1 + $0x78] ss:$12 sps:$4 sm:$0xff]  }
   0x4   :  { %399 = vmatprep.subr.bf16.mxu1 %v453_v0  ;;  %201 = vmatprep.subr.bf16.mxu0 %v424_v5  ;;  %v432_v11 = vld [vmem:[%s566_s1 + $0x64] ss:$12 sps:$4 sm:$0xff]   ;;  %v434_v12 = vld [vmem:[%s566_s1 + $0x68] ss:$12 sps:$4 sm:$0xff]   ;;  %v435_v13 = vld [vmem:[%s566_s1 + $0x60] ss:$12 sps:$4 sm:$0xff]  }
   0x5   :  { %v436_v14 = vld [vmem:[%s566_s1 + $0x4c] ss:$12 sps:$4 sm:$0xff]   ;;  %v438_v15 = vld [vmem:[%s566_s1 + $0x50] ss:$12 sps:$4 sm:$0xff]   ;;  %v439_v16 = vld [vmem:[%s566_s1 + $0x48] ss:$12 sps:$4 sm:$0xff]  }
   0x6   :  { %v440_v17 = vld [vmem:[%s566_s1 + $0x34] ss:$12 sps:$4 sm:$0xff]   ;;  %v442_v18 = vld [vmem:[%s566_s1 + $0x38] ss:$12 sps:$4 sm:$0xff]   ;;  %v443_v19 = vld [vmem:[%s566_s1 + $0x30] ss:$12 sps:$4 sm:$0xff]  }
   0x7   :  { %400 = vmatpush3.bf16.msra.mxu1 %v426_v6  ;;  %202 = vmatpush1.bf16.msra.mxu0 %v427_v7  ;;  %v444_v20 = vld [vmem:[%s566_s1 + $0x1c] ss:$12 sps:$4 sm:$0xff]   ;;  %v446_v21 = vld [vmem:[%s566_s1 + $0x20] ss:$12 sps:$4 sm:$0xff]   ;;  %v447_v22 = vld [vmem:[%s566_s1 + $0x18] ss:$12 sps:$4 sm:$0xff]  }
   0x8   :  { %401 = vmatprep.subr.bf16.mxu1 %v453_v0  ;;  %203 = vmatprep.subr.bf16.mxu0 %v428_v8  ;;  %v448_v23 = vld [vmem:[%s566_s1 + $0x4] ss:$12 sps:$4 sm:$0xff]   ;;  %v450_v24 = vld [vmem:[%s566_s1 + $0x8] ss:$12 sps:$4 sm:$0xff]   ;;  %v451_v25 = vld [vmem:[%s566_s1] ss:$12 sps:$4 sm:$0xff]  }
   0x9   :  { %v452_v26 = vld [vmem:[%s567_s0] sm:$0xff]   ;;  %v307_v28 = vshrl.u32 %v306_v27, 7 }
   0xa   :  { %v304_v30 = vld [vmem:[%s568_s2] sm:$0x7] }
   0xb   :  { %402 = vmatpush3.bf16.msra.mxu1 %v430_v9  ;;  %204 = vmatpush1.bf16.msra.mxu0 %v431_v10  ;;  %v316_v29 = vsub.s32 2, %v307_v28  ;;  %v308_v31 = vsub.s32 0, %v307_v28  ;;  %v312_v32 = vsub.s32 1, %v307_v28 }
   0xc   :  { %403 = vmatprep.subr.bf16.mxu1 %v453_v0  ;;  %205 = vmatprep.subr.bf16.mxu0 %v432_v11 }
   0xd   :  { %v317_v33 = vrot.slane %v304_v30, %v316_v29  ;;  %v309_v35 = vrot.slane %v304_v30, %v308_v31  ;;  %v313_v36 = vrot.slane %v304_v30, %v312_v32 }
   0xf   :  { %404 = vmatpush3.bf16.msra.mxu1 %v434_v12  ;;  %206 = vmatpush1.bf16.msra.mxu0 %v435_v13 }
  0x10   :  { %405 = vmatprep.subr.bf16.mxu1 %v453_v0  ;;  %207 = vmatprep.subr.bf16.mxu0 %v436_v14 }
  0x13   :  { %406 = vmatpush3.bf16.msra.mxu1 %v438_v15  ;;  %208 = vmatpush1.bf16.msra.mxu0 %v439_v16 }
  0x14   :  { %407 = vmatprep.subr.bf16.mxu1 %v453_v0  ;;  %209 = vmatprep.subr.bf16.mxu0 %v440_v17 }
  0x17   :  { %408 = vmatpush3.bf16.msra.mxu1 %v442_v18  ;;  %210 = vmatpush1.bf16.msra.mxu0 %v443_v19 }
  0x18   :  { %409 = vmatprep.subr.bf16.mxu1 %v453_v0  ;;  %211 = vmatprep.subr.bf16.mxu0 %v444_v20 }
  0x1b   :  { %410 = vmatpush3.bf16.msra.mxu1 %v446_v21  ;;  %212 = vmatpush1.bf16.msra.mxu0 %v447_v22 }
  0x1c   :  { %411 = vmatprep.subr.bf16.mxu1 %v453_v0  ;;  %213 = vmatprep.subr.bf16.mxu0 %v448_v23 }
  0x1f   :  { %412 = vmatpush3.bf16.msra.mxu1 %v450_v24  ;;  %214 = vmatpush1.bf16.msra.mxu0 %v451_v25 }
  0x22   :  { %414 = vmatmul.mubr.bf16.vlgmr.msra.gmra.mxu1 %v452_v26  ;;  %232 = vmatmul.mubr.bf16.vlgmr.msra.gmra.mxu0 %v452_v26 }
  0xe2   :  { %v276_v34 = vpop.f32.mrf.mxu1  ;;  %v233_v38 = vpop.f32.mrf.mxu0 }
  0xe3   :  { %v323_v37 = vadd.f32 %v317_v33, %v276_v34  ;;  %v321_v42 = vadd.f32 %v309_v35, %v233_v38 }
  0xe4   :  { %v415_v39 = vpop.f32.mrf.mxu1  ;;  %v235_v41 = vpop.f32.mrf.mxu0 }
  0xe5   :  { %v385_v40 = vpack.c.bf16 %v323_v37, %v323_v37  ;;  %v322_v43 = vadd.f32 %v313_v36, %v235_v41 }
  0xe6   :  { %v279_v44 = vpop.f32.mrf.mxu1  ;;  %v237_v46 = vpop.f32.mrf.mxu0 }
  0xe7   :  { %348 = vst [vmem:[%s569_s3 + $0x8] sm:$0xf] %v385_v40  ;;  %v326_v45 = vadd.f32 %v317_v33, %v279_v44  ;;  %v384_v47 = vpack.c.bf16 %v322_v43, %v321_v42  ;;  %v324_v51 = vadd.f32 %v309_v35, %v237_v46 }
  0xe8   :  { %v416_v48 = vpop.f32.mrf.mxu1  ;;  %v239_v50 = vpop.f32.mrf.mxu0 }
  0xe9   :  { %v387_v49 = vpack.c.bf16 %v326_v45, %v326_v45  ;;  %347 = vst [vmem:[%s569_s3] sm:$0xff] %v384_v47  ;;  %v325_v52 = vadd.f32 %v313_v36, %v239_v50 }
  0xeb   :  { %350 = vst [vmem:[%s569_s3 + $0x14] sm:$0xf] %v387_v49  ;;  %v386_v53 = vpack.c.bf16 %v325_v52, %v324_v51 }
  0xed   :  { %349 = vst [vmem:[%s569_s3 + $0xc] sm:$0xff] %v386_v53 }

// kernel: deberta_classifier_forward.13
= control target key start
LH: loop header
LB: loop body
LE: loop exit
PB: predicated region body
PF: predicated region fallthrough
CT: control target
= control target key end

     0   :  { %s1088_s15 = smov 0   ;;  %s1090_s16 = smov 0   ;;  %s1216_s0 = inlined_call_operand.vmem [shape: bf16[2,8,384], index: 0, kind: input, shape index: {}, may-alias: {0,1,2}]   ;;  %s1217_s1 = inlined_call_operand.vmem [shape: bf16[2,8,384], index: 1, kind: input, shape index: {}, may-alias: {0,1,2}]   ;;  %s1218_s2 = inlined_call_operand.vmem [shape: bf16[2,8,384], index: 2, kind: input, shape index: {}, may-alias: {0,1,2}]   ;;  %s1219_s3 = inlined_call_operand.vmem [shape: f32[2,1,8], index: 3, kind: input, shape index: {}]   ;;  %s1220_s4 = inlined_call_operand.vmem [shape: bf16[2,8,128], index: 4, kind: output, shape index: {}]  }
   0x1   :  { %s1092_s17 = smov 0  }
   0x2 LB: > { %s26_s18 = sadd.s32 1, %s1052_s16  ;;  %p900_p0 = scmp.ge.s32.totalorder %s1056_s17, 1  ;;  %s1056_s17 = sphi %s1092_s17, %s14_s17   ;;  %s1052_s16 = sphi %s1090_s16, %s1222_s16   ;;  %s1048_s15 = sphi %s1088_s15, %s1221_s15  }
   0x3   : > { %p28_p1 = scmp.ge.s32.totalorder %s26_s18, 2  ;;  %p212_p2 = scmp.lt.s32.totalorder %s1056_s17, 3 }
   0x5   : > { %s1224_s18 = smov (%p28_p1, %s26_s18), 0  ;;  %p213_p3 = pnand %p900_p0, %p212_p2 }
   0x6   : > { %p259_p4 = scmp.lt.s32.totalorder (!%p213_p3), %s1048_s15, 1  ;;  %s1060_s29 = smov (!%p213_p3), 96  }
   0x7   : > { %216 = sbr.rel (%p213_p3) target bundleno = 1416 (0x588), region = 36  ;;  %s1061_s30 = smov (!%p213_p3), 64  }
   0x8   : > { %s1062_s5 = smov (!%p213_p3), 32  }
   0xc   : > { %v1058_v0 = vmov 0.0   ;;  %vm1059_vm0 = vmmov 0   ;;  %s1226_s15 = smov (!%p259_p4, %s1048_s15), 1  ;;  %vm301_vm1 = vcmask 261120   ;;  %vm348_vm2 = vcmask 64512  }
   0xd   : > { %937 = vmatprep.subr.bf16.mxu0 %v1058_v0  ;;  %939 = vmatprep.mubr.msk.bf16.mxu0 %vm1059_vm0, %v1058_v0  ;;  %s1115_s19 = smul.u32 12, %s1226_s15  ;;  %s282_s28 = scalar_lea.vmem %s1219_s3, %s1226_s15  ;;  %vm364_vm3 = vcmask 1043456   ;;  %vm763_vm4 = vcmask 523264   ;;  %vm766_vm5 = vcmask 785408  }
   0xe   : > { %943 = vmatprep.subr.bf16.mxu1 %v1058_v0  ;;  %945 = vmatprep.mubr.msk.bf16.mxu1 %vm1059_vm0, %v1058_v0  ;;  %v1134_v4 = vld [vmem:[%s282_s28] ss:$0 sm:$0xff]  ;;  %s904_s9 = sshll.u32 %s1226_s15, 2 }
   0xf   : > { %s834_s22 = scalar_lea.vmem %s1217_s1, %s1115_s19  ;;  %s267_s25 = scalar_lea.vmem %s1216_s0, %s1115_s19 }
  0x10   : > { %v905_v1 = vld [vmem:[%s834_s22 + $0x4] sm:$0xf]  ;;  %v291_v3 = vld [vmem:[%s267_s25] sm:$0xf]  ;;  %s838_s8 = scalar_lea.vmem %s1218_s2, %s1115_s19  ;;  %s289_s12 = scalar_lea.vmem %s1220_s4, %s904_s9 }
  0x11   : > { %v306_v2 = vsel %vm301_vm1, %v905_v1, 0  ;;  %v911_v11 = vcombine.low %v905_v1, %v905_v1  ;;  %v910_v12 = vcombine.low %v291_v3, %v291_v3  ;;  %v1148_v18 = vld [vmem:[%s838_s8 + $0x8] sm:$0xf] }
  0x12   : > { %938 = vmatpush3.bf16.xpose.msra.mxu0 %v306_v2  ;;  %v366_v19 = vsel %vm364_vm3, %v1148_v18, 0  ;;  %v913_v2 = vcombine.low %v1148_v18, %v1148_v18 }
  0x13   : > { %955 = vmatprep.subr.bf16.mxu0 %v1058_v0  ;;  %417 = vrot.lane.b32.xlu1 %v911_v11, %s1060_s29 }
  0x14   : > { %944 = vmatpush3.bf16.msra.mxu1 %v366_v19 }
  0x15   : > { %949 = vmatprep.subr.bf16.mxu1 %v1058_v0 }
  0x17   : > { %412 = vrot.lane.b32.xlu1 %v910_v12, %s1060_s29 }
  0x19   : > { %940 = vmatmul.mubr.msk.bf16.vlgmr.msra.gmra.mxu0 %vm301_vm1, %v291_v3 }
  0x1a   : > { %957 = vmatprep.mubr.msk.bf16.mxu0 %vm1059_vm0, %v1058_v0 }
  0x1b   : > { %529 = vrot.lane.b32.xlu1 %v910_v12, %s1061_s30 }
  0x1f   : > { %642 = vrot.lane.b32.xlu1 %v911_v11, %s1062_s5 }
  0x23   : > { %640 = vrot.lane.b32.xlu1 %v910_v12, %s1062_s5 }
  0x85   : > { %v418_v22 = vpop.permute.xlu1 %417 }
  0x86   : > { %v423_v24 = vsel %vm301_vm1, %v418_v22, 0 }
  0x89   : > { %v413_v26 = vpop.permute.xlu1 %412 }
  0x8d   : > { %v530_v28 = vpop.permute.xlu1 %529 }
  0x91   : > { %v643_v30 = vpop.permute.xlu1 %642 }
  0x92   : > { %v648_v31 = vsel %vm301_vm1, %v643_v30, 0 }
  0x95   : > { %v641_v32 = vpop.permute.xlu1 %640 }
  0xd9   : > { %v342_v5 = vpop.f32.mrf.mxu0 }
  0xda   : > { %v343_v6 = vadd.f32 %v1134_v4, %v342_v5 }
  0xdb   : > { %v941_v7 = vpop.f32.mrf.mxu0 }
  0xdc   : > { %v349_v8 = vsel %vm348_vm2, %v343_v6, -inf }
  0xdd   : > { %350 = vmax.xlane.f32.xlu0 %v349_v8  ;;  %v345_v9 = vpop.f32.mrf.mxu0 }
  0xdf   : > { %v942_v10 = vpop.f32.mrf.mxu0 }
 0x166   : > { %v351_v13 = vpop.xlane.xlu0 %350 }
 0x167   : > { %v352_v14 = vsub.f32 %v343_v6, %v351_v13 }
 0x169   : > { %v353_v15 = vmul.f32 1.442695, %v352_v14 }
 0x16b   : > { %1018 = vpow2.f32 %v353_v15 }
 0x178   : > { %v1019_v16 = vpop.eup %1018 }
 0x179   : > { %v355_v17 = vsel %vm348_vm2, %v1019_v16, 0.0 }
 0x17a   : > { %356 = vadd.xlane.f32.xlu0 %v355_v17 }
 0x190   : > { %531 = vrot.lane.b32.xlu0 %v911_v11, %s1061_s30 }
 0x203   : > { %v357_v20 = vpop.xlane.xlu0 %356 }
 0x204   : > { %1020 = vrcp.f32 %v357_v20 }
 0x207   : > { %v532_v27 = vpop.permute.xlu0 %531 }
 0x208   : > { %v537_v29 = vsel %vm301_vm1, %v532_v27, 0 }
 0x211   : > { %v1021_v21 = vpop.eup %1020 }
 0x212   : > { %v359_v23 = vmul.f32 %v1021_v21, %v1019_v16 }
 0x214   : > { %v360_v25 = vpack.c.bf16 %v359_v23, %v359_v23 }
 0x216   : > { %946 = vmatmul.mubr.msk.bf16.vlgmr.msra.gmra.mxu1 %vm348_vm2, %v360_v25 }
 0x217   : > { %950 = vmatpush3.bf16.xpose.msra.mxu1 %v423_v24  ;;  %951 = vmatprep.mubr.msk.bf16.mxu1 %vm1059_vm0, %v1058_v0 }
 0x218   : > { %961 = vmatprep.subr.bf16.mxu1 %v1058_v0 }
 0x21e   : > { %952 = vmatmul.mubr.msk.bf16.vlgmr.msra.gmra.mxu1 %vm301_vm1, %v413_v26 }
 0x21f   : > { %962 = vmatpush3.bf16.xpose.msra.mxu1 %v537_v29  ;;  %963 = vmatprep.mubr.msk.bf16.mxu1 %vm1059_vm0, %v1058_v0 }
 0x220   : > { %973 = vmatprep.subr.bf16.mxu1 %v1058_v0 }
 0x226   : > { %964 = vmatmul.mubr.msk.bf16.vlgmr.msra.gmra.mxu1 %vm301_vm1, %v530_v28 }
 0x227   : > { %974 = vmatpush3.bf16.xpose.msra.mxu1 %v648_v31  ;;  %975 = vmatprep.mubr.msk.bf16.mxu1 %vm1059_vm0, %v1058_v0 }
 0x22e   : > { %976 = vmatmul.mubr.msk.bf16.vlgmr.msra.gmra.mxu1 %vm301_vm1, %v641_v32 }
 0x2d6   : > { %v1169_v33 = vpop.f32.mrf.mxu1 }
 0x2d8   : > { %v947_v34 = vpop.f32.mrf.mxu1 }
 0x2da   : > { %v405_v35 = vpop.f32.mrf.mxu1 }
 0x2dc   : > { %v948_v36 = vpop.f32.mrf.mxu1 }
 0x2de   : > { %v459_v37 = vpop.f32.mrf.mxu1 }
 0x2df   : > { %v460_v38 = vadd.f32 %v1134_v4, %v459_v37 }
 0x2e0   : > { %v953_v39 = vpop.f32.mrf.mxu1 }
 0x2e1   : > { %v465_v40 = vsel %vm348_vm2, %v460_v38, -inf }
 0x2e2   : > { %466 = vmax.xlane.f32.xlu1 %v465_v40  ;;  %v462_v41 = vpop.f32.mrf.mxu1 }
 0x2e4   : > { %v954_v42 = vpop.f32.mrf.mxu1 }
 0x2e5   : > { %v408_v42 = vpack.c.bf16 %v1169_v33, %v1169_v33 }
 0x2e6   : > { %v573_v43 = vpop.f32.mrf.mxu1 }
 0x2e7   : > { %v574_v44 = vadd.f32 %v1134_v4, %v573_v43 }
 0x2e8   : > { %v965_v45 = vpop.f32.mrf.mxu1 }
 0x2e9   : > { %v579_v46 = vsel %vm348_vm2, %v574_v44, -inf }
 0x2ea   : > { %580 = vmax.xlane.f32.xlu0 %v579_v46  ;;  %v576_v47 = vpop.f32.mrf.mxu1 }
 0x2ec   : > { %v966_v48 = vpop.f32.mrf.mxu1 }
 0x2ee   : > { %v684_v49 = vpop.f32.mrf.mxu1 }
 0x2ef   : > { %v685_v50 = vadd.f32 %v1134_v4, %v684_v49 }
 0x2f0   : > { %v977_v51 = vpop.f32.mrf.mxu1 }
 0x2f1   : > { %v690_v52 = vsel %vm348_vm2, %v685_v50, -inf }
 0x2f2   : > { %691 = vmax.xlane.f32.xlu1 %v690_v52  ;;  %v687_v53 = vpop.f32.mrf.mxu1 }
 0x2f4   : > { %v978_v54 = vpop.f32.mrf.mxu1 }
 0x36b   : > { %v467_v55 = vpop.xlane.xlu1 %466 }
 0x36c   : > { %v468_v56 = vsub.f32 %v460_v38, %v467_v55 }
 0x36e   : > { %v469_v57 = vmul.f32 1.442695, %v468_v56 }
 0x370   : > { %1022 = vpow2.f32 %v469_v57 }
 0x373   : > { %v581_v58 = vpop.xlane.xlu0 %580 }
 0x374   : > { %v582_v59 = vsub.f32 %v574_v44, %v581_v58 }
 0x376   : > { %v583_v60 = vmul.f32 1.442695, %v582_v59 }
 0x378   : > { %1024 = vpow2.f32 %v583_v60 }
 0x37b   : > { %v692_v3 = vpop.xlane.xlu1 %691 }
 0x37c   : > { %v693_v4 = vsub.f32 %v685_v50, %v692_v3 }
 0x37d   : > { %v1023_v61 = vpop.eup %1022 }
 0x37e   : > { %v471_v62 = vsel %vm348_vm2, %v1023_v61, 0.0  ;;  %v694_v5 = vmul.f32 1.442695, %v693_v4 }
 0x37f   : > { %472 = vadd.xlane.f32.xlu1 %v471_v62 }
 0x380   : > { %1026 = vpow2.f32 %v694_v5 }
 0x385   : > { %v1025_v63 = vpop.eup %1024 }
 0x386   : > { %v585_v1 = vsel %vm348_vm2, %v1025_v63, 0.0 }
 0x387   : > { %586 = vadd.xlane.f32.xlu0 %v585_v1 }
 0x38d   : > { %v1027_v6 = vpop.eup %1026 }
 0x38e   : > { %v696_v7 = vsel %vm348_vm2, %v1027_v6, 0.0 }
 0x390   : > { %591 = vrot.lane.b32.xlu1 %v913_v2, %s1061_s30 }
 0x39d   : > { %480 = vrot.lane.b32.xlu0 %v913_v2, %s1060_s29 }
 0x3b4   : > { %697 = vadd.xlane.f32.xlu1 %v696_v7 }
 0x3c5   : > { %702 = vrot.lane.b32.xlu1 %v913_v2, %s1062_s5 }
 0x408   : > { %v473_v8 = vpop.xlane.xlu1 %472 }
 0x409   : > { %1028 = vrcp.f32 %v473_v8 }
 0x40c   : > { %v592_v14 = vpop.permute.xlu1 %591 }
 0x40d   : > { %v597_v16 = vsel %vm364_vm3, %v592_v14, 0 }
 0x410   : > { %v587_v9 = vpop.xlane.xlu0 %586 }
 0x411   : > { %1030 = vrcp.f32 %v587_v9 }
 0x414   : > { %v481_v10 = vpop.permute.xlu0 %480 }
 0x415   : > { %v486_v11 = vsel %vm364_vm3, %v481_v10, 0 }
 0x416   : > { %v1029_v12 = vpop.eup %1028  ;;  %956 = vmatpush3.bf16.msra.mxu0 %v486_v11 }
 0x417   : > { %967 = vmatprep.subr.bf16.mxu0 %v1058_v0  ;;  %v475_v13 = vmul.f32 %v1029_v12, %v1023_v61 }
 0x419   : > { %v476_v15 = vpack.c.bf16 %v475_v13, %v475_v13 }
 0x41b   : > { %958 = vmatmul.mubr.msk.bf16.vlgmr.msra.gmra.mxu0 %vm348_vm2, %v476_v15 }
 0x41c   : > { %968 = vmatpush3.bf16.msra.mxu0 %v597_v16  ;;  %969 = vmatprep.mubr.msk.bf16.mxu0 %vm1059_vm0, %v1058_v0 }
 0x41d   : > { %979 = vmatprep.subr.bf16.mxu0 %v1058_v0 }
 0x41e   : > { %v1031_v17 = vpop.eup %1030 }
 0x41f   : > { %v589_v18 = vmul.f32 %v1031_v17, %v1025_v63 }
 0x421   : > { %v590_v19 = vpack.c.bf16 %v589_v18, %v589_v18 }
 0x423   : > { %970 = vmatmul.mubr.msk.bf16.vlgmr.msra.gmra.mxu0 %vm348_vm2, %v590_v19 }
 0x424   : > { %981 = vmatprep.mubr.msk.bf16.mxu0 %vm1059_vm0, %v1058_v0 }
 0x43d   : > { %v698_v20 = vpop.xlane.xlu1 %697 }
 0x43e   : > { %1032 = vrcp.f32 %v698_v20 }
 0x441   : > { %v703_v21 = vpop.permute.xlu1 %702 }
 0x442   : > { %v708_v22 = vsel %vm364_vm3, %v703_v21, 0 }
 0x443   : > { %980 = vmatpush3.bf16.msra.mxu0 %v708_v22 }
 0x44b   : > { %v1033_v23 = vpop.eup %1032 }
 0x44c   : > { %v700_v24 = vmul.f32 %v1033_v23, %v1027_v6 }
 0x44e   : > { %v701_v25 = vpack.c.bf16 %v700_v24, %v700_v24 }
 0x450   : > { %982 = vmatmul.mubr.msk.bf16.vlgmr.msra.gmra.mxu0 %vm348_vm2, %v701_v25 }
 0x4db   : > { %v522_v26 = vpop.f32.mrf.mxu0 }
 0x4dc   : > { %v528_v27 = vpack.c.bf16 %v522_v26, %v522_v26 }
 0x4dd   : > { %v959_v28 = vpop.f32.mrf.mxu0 }
 0x4de   : > { %752 = vrot.lane.b32.xlu0 %v528_v27, %s1062_s5 }
 0x4df   : > { %v525_v29 = vpop.f32.mrf.mxu0 }
 0x4e1   : > { %v960_v30 = vpop.f32.mrf.mxu0 }
 0x4e3   : > { %v633_v0 = vpop.f32.mrf.mxu0 }
 0x4e4   : > { %v639_v31 = vpack.c.bf16 %v633_v0, %v633_v0 }
 0x4e5   : > { %v971_v32 = vpop.f32.mrf.mxu0 }
 0x4e6   : > { %755 = vrot.lane.b32.xlu1 %v639_v31, %s1061_s30 }
 0x4e7   : > { %v636_v34 = vpop.f32.mrf.mxu0 }
 0x4e9   : > { %v972_v35 = vpop.f32.mrf.mxu0 }
 0x510   : > { %v744_v36 = vpop.f32.mrf.mxu0 }
 0x511   : > { %v750_v37 = vpack.c.bf16 %v744_v36, %v744_v36 }
 0x512   : > { %v983_v38 = vpop.f32.mrf.mxu0 }
 0x513   : > { %758 = vrot.lane.b32.xlu0 %v750_v37, %s1060_s29 }
 0x514   : > { %v747_v39 = vpop.f32.mrf.mxu0 }
 0x516   : > { %v984_v40 = vpop.f32.mrf.mxu0 }
 0x550   : > { %v753_v41 = vpop.permute.xlu0 %752 }
 0x551   : > { %v762_v44 = vsel %vm301_vm1, %v408_v42, %v753_v41 }
 0x558   : > { %v756_v43 = vpop.permute.xlu1 %755 }
 0x559   : > { %v765_v45 = vsel %vm763_vm4, %v762_v44, %v756_v43 }
 0x585   : > { %v759_v46 = vpop.permute.xlu0 %758 }
 0x586   : > { %v768_v47 = vsel %vm766_vm5, %v765_v45, %v759_v46 }
 0x587   : > { %770 = vst [vmem:[%s289_s12] sm:$0xf] %v768_v47 }
 0x588 PF: > { %s14_s17 = sadd.s32 1, %s1056_s17   ;;  %s1221_s15 = smov %s1052_s16 }
 0x589   : > { %p11_p5 = scmp.ge.s32.totalorder %s14_s17, 4   ;;  %s1222_s16 = smov %s1224_s18 }
 0x58b   :  { %13 = sbr.rel (!%p11_p5) target bundleno = 2 (0x2), region = 75 }

// kernel: deberta_classifier_forward.15
= control target key start
LH: loop header
LB: loop body
LE: loop exit
PB: predicated region body
PF: predicated region fallthrough
CT: control target
= control target key end

     0   :  { %v314_v1 = vmov 0   ;;  %v191_v18 = vlaneseq  ;;  %s395_s1 = inlined_call_operand.vmem [shape: bf16[128,256], index: 1, kind: input, shape index: {}]   ;;  %s396_s0 = inlined_call_operand.vmem [shape: bf16[16,128], index: 0, kind: input, shape index: {}]   ;;  %s397_s2 = inlined_call_operand.vmem [shape: f32[1,256], index: 2, kind: input, shape index: {}]   ;;  %s398_s3 = inlined_call_operand.vmem [shape: bf16[16,256], index: 3, kind: output, shape index: {}]  }
   0x1   :  { %v281_v0 = vld [vmem:[%s395_s1 + $0x74] ss:$8 sps:$4 sm:$0xff]   ;;  %163 = vmatprep.mubr.bf16.mxu0 %v314_v1  ;;  %v283_v2 = vld [vmem:[%s395_s1 + $0x70] ss:$8 sps:$4 sm:$0xff]   ;;  %v284_v3 = vld [vmem:[%s395_s1 + $0x64] ss:$8 sps:$4 sm:$0xff]  }
   0x2   :  { %131 = vmatprep.subr.bf16.mxu0 %v281_v0  ;;  %v286_v4 = vld [vmem:[%s395_s1 + $0x60] ss:$8 sps:$4 sm:$0xff]   ;;  %v287_v5 = vld [vmem:[%s395_s1 + $0x54] ss:$8 sps:$4 sm:$0xff]   ;;  %v289_v6 = vld [vmem:[%s395_s1 + $0x50] ss:$8 sps:$4 sm:$0xff]  }
   0x3   :  { %132 = vmatpush1.bf16.msra.mxu0 %v283_v2  ;;  %v290_v7 = vld [vmem:[%s395_s1 + $0x44] ss:$8 sps:$4 sm:$0xff]   ;;  %v292_v8 = vld [vmem:[%s395_s1 + $0x40] ss:$8 sps:$4 sm:$0xff]   ;;  %v293_v9 = vld [vmem:[%s395_s1 + $0x34] ss:$8 sps:$4 sm:$0xff]  }
   0x4   :  { %133 = vmatprep.subr.bf16.mxu0 %v284_v3  ;;  %v295_v10 = vld [vmem:[%s395_s1 + $0x30] ss:$8 sps:$4 sm:$0xff]   ;;  %v296_v11 = vld [vmem:[%s395_s1 + $0x24] ss:$8 sps:$4 sm:$0xff]   ;;  %v298_v12 = vld [vmem:[%s395_s1 + $0x20] ss:$8 sps:$4 sm:$0xff]  }
   0x5   :  { %v299_v13 = vld [vmem:[%s395_s1 + $0x14] ss:$8 sps:$4 sm:$0xff]   ;;  %v301_v14 = vld [vmem:[%s395_s1 + $0x10] ss:$8 sps:$4 sm:$0xff]   ;;  %v302_v15 = vld [vmem:[%s395_s1 + $0x4] ss:$8 sps:$4 sm:$0xff]  }
   0x6   :  { %v304_v16 = vld [vmem:[%s395_s1] ss:$8 sps:$4 sm:$0xff]   ;;  %v192_v19 = vshrl.u32 %v191_v18, 7 }
   0x7   :  { %134 = vmatpush1.bf16.msra.mxu0 %v286_v4  ;;  %v305_v17 = vld [vmem:[%s396_s0] sm:$0xff]  }
   0x8   :  { %135 = vmatprep.subr.bf16.mxu0 %v287_v5  ;;  %v193_v20 = vsub.s32 0, %v192_v19  ;;  %v189_v21 = vld [vmem:[%s397_s2] sm:$0x3]  ;;  %v197_v22 = vsub.s32 1, %v192_v19 }
   0xa   :  { %v194_v23 = vrot.slane %v189_v21, %v193_v20  ;;  %v198_v24 = vrot.slane %v189_v21, %v197_v22 }
   0xb   :  { %136 = vmatpush1.bf16.msra.mxu0 %v289_v6 }
   0xc   :  { %137 = vmatprep.subr.bf16.mxu0 %v290_v7 }
   0xf   :  { %138 = vmatpush1.bf16.msra.mxu0 %v292_v8 }
  0x10   :  { %139 = vmatprep.subr.bf16.mxu0 %v293_v9 }
  0x13   :  { %140 = vmatpush1.bf16.msra.mxu0 %v295_v10 }
  0x14   :  { %141 = vmatprep.subr.bf16.mxu0 %v296_v11 }
  0x17   :  { %142 = vmatpush1.bf16.msra.mxu0 %v298_v12 }
  0x18   :  { %143 = vmatprep.subr.bf16.mxu0 %v299_v13 }
  0x1b   :  { %144 = vmatpush1.bf16.msra.mxu0 %v301_v14 }
  0x1c   :  { %145 = vmatprep.subr.bf16.mxu0 %v302_v15 }
  0x1f   :  { %146 = vmatpush1.bf16.msra.mxu0 %v304_v16 }
  0x22   :  { %164 = vmatmul.mubr.bf16.vlgmr.msra.gmra.mxu0 %v305_v17 }
  0xe2   :  { %v165_v25 = vpop.f32.mrf.mxu0 }
  0xe3   :  { %v201_v26 = vadd.f32 %v194_v23, %v165_v25 }
  0xe4   :  { %v167_v27 = vpop.f32.mrf.mxu0 }
  0xe5   :  { %v205_v28 = vmul.f32 %v201_v26, %v201_v26  ;;  %v202_v29 = vadd.f32 %v198_v24, %v167_v27 }
  0xe6   :  { %v169_v30 = vpop.f32.mrf.mxu0 }
  0xe7   :  { %v209_v31 = vmul.f32 %v205_v28, %v201_v26  ;;  %v206_v32 = vmul.f32 %v202_v29, %v202_v29  ;;  %v203_v33 = vadd.f32 %v194_v23, %v169_v30 }
  0xe8   :  { %v171_v34 = vpop.f32.mrf.mxu0 }
  0xe9   :  { %v213_v35 = vmul.f32 0.044715, %v209_v31  ;;  %v210_v36 = vmul.f32 %v206_v32, %v202_v29  ;;  %v207_v37 = vmul.f32 %v203_v33, %v203_v33  ;;  %v204_v38 = vadd.f32 %v198_v24, %v171_v34 }
  0xeb   :  { %v217_v39 = vadd.f32 %v213_v35, %v201_v26  ;;  %v214_v40 = vmul.f32 0.044715, %v210_v36  ;;  %v211_v41 = vmul.f32 %v207_v37, %v203_v33  ;;  %v208_v42 = vmul.f32 %v204_v38, %v204_v38 }
  0xed   :  { %v221_v43 = vmul.f32 0.7978846, %v217_v39  ;;  %v218_v44 = vadd.f32 %v214_v40, %v202_v29  ;;  %v215_v45 = vmul.f32 0.044715, %v211_v41  ;;  %v212_v46 = vmul.f32 %v208_v42, %v204_v38 }
  0xef   :  { %306 = vtanh.f32 %v221_v43  ;;  %v222_v47 = vmul.f32 0.7978846, %v218_v44  ;;  %v219_v48 = vadd.f32 %v215_v45, %v203_v33  ;;  %v216_v49 = vmul.f32 0.044715, %v212_v46 }
  0xf1   :  { %308 = vtanh.f32 %v222_v47  ;;  %v223_v50 = vmul.f32 0.7978846, %v219_v48  ;;  %v220_v51 = vadd.f32 %v216_v49, %v204_v38 }
  0xf3   :  { %310 = vtanh.f32 %v223_v50  ;;  %v224_v52 = vmul.f32 0.7978846, %v220_v51 }
  0xf5   :  { %312 = vtanh.f32 %v224_v52 }
  0xfc   :  { %v307_v53 = vpop.eup %306 }
  0xfd   :  { %v229_v54 = vadd.f32 1.0, %v307_v53 }
  0xfe   :  { %v309_v55 = vpop.eup %308 }
  0xff   :  { %v233_v56 = vmul.f32 0.5, %v229_v54  ;;  %v230_v57 = vadd.f32 1.0, %v309_v55 }
 0x100   :  { %v311_v58 = vpop.eup %310 }
 0x101   :  { %v234_v59 = vmul.f32 0.5, %v230_v57  ;;  %v231_v60 = vadd.f32 1.0, %v311_v58  ;;  %v237_v62 = vmul.f32 %v233_v56, %v201_v26 }
 0x102   :  { %v313_v61 = vpop.eup %312 }
 0x103   :  { %v238_v63 = vmul.f32 %v234_v59, %v202_v29  ;;  %v235_v0 = vmul.f32 0.5, %v231_v60  ;;  %v232_v1 = vadd.f32 1.0, %v313_v61 }
 0x105   :  { %v278_v2 = vpack.c.bf16 %v238_v63, %v237_v62  ;;  %v236_v3 = vmul.f32 0.5, %v232_v1  ;;  %v239_v4 = vmul.f32 %v235_v0, %v203_v33 }
 0x107   :  { %253 = vst [vmem:[%s398_s3] sm:$0xff] %v278_v2  ;;  %v240_v5 = vmul.f32 %v236_v3, %v204_v38 }
 0x109   :  { %v279_v6 = vpack.c.bf16 %v240_v5, %v239_v4 }
 0x10b   :  { %254 = vst [vmem:[%s398_s3 + $0x8] sm:$0xff] %v279_v6 }

// kernel: deberta_classifier_forward.16
= control target key start
LH: loop header
LB: loop body
LE: loop exit
PB: predicated region body
PF: predicated region fallthrough
CT: control target
= control target key end

     0   :  { %s475_s1 = inlined_call_operand.vmem [shape: bf16[256,128], index: 1, kind: input, shape index: {}]   ;;  %s476_s0 = inlined_call_operand.vmem [shape: bf16[16,256], index: 0, kind: input, shape index: {}]   ;;  %s477_s3 = inlined_call_operand.vmem [shape: bf16[16,128], index: 3, kind: input, shape index: {}]   ;;  %s478_s2 = inlined_call_operand.vmem [shape: f32[1,128], index: 2, kind: input, shape index: {}]   ;;  %s479_s4 = inlined_call_operand.vmem [shape: f32[1,128], index: 4, kind: input, shape index: {}]   ;;  %s480_s5 = inlined_call_operand.vmem [shape: f32[1,128], index: 5, kind: input, shape index: {}]   ;;  %s481_s6 = inlined_call_operand.vmem [shape: bf16[16,128], index: 6, kind: output, shape index: {}]  }
   0x1   :  { %v348_v0 = vld [vmem:[%s475_s1 + $0x78] sm:$0xff]   ;;  %v350_v2 = vld [vmem:[%s475_s1 + $0x70] sm:$0xff]   ;;  %v352_v4 = vld [vmem:[%s475_s1 + $0x68] sm:$0xff]  }
   0x2   :  { %v349_v1 = vld [vmem:[%s475_s1 + $0x38] sm:$0xff]   ;;  %326 = vmatprep.subr.bf16.mxu0 %v348_v0  ;;  %v351_v3 = vld [vmem:[%s475_s1 + $0x30] sm:$0xff]   ;;  %v353_v5 = vld [vmem:[%s475_s1 + $0x28] sm:$0xff]  }
   0x3   :  { %327 = vmatpush3.bf16.msra.mxu0 %v349_v1  ;;  %v354_v6 = vld [vmem:[%s475_s1 + $0x60] sm:$0xff]   ;;  %v356_v8 = vld [vmem:[%s475_s1 + $0x58] sm:$0xff]   ;;  %v358_v10 = vld [vmem:[%s475_s1 + $0x50] sm:$0xff]  }
   0x4   :  { %328 = vmatprep.subr.bf16.mxu0 %v350_v2  ;;  %v355_v7 = vld [vmem:[%s475_s1 + $0x20] sm:$0xff]   ;;  %v357_v9 = vld [vmem:[%s475_s1 + $0x18] sm:$0xff]   ;;  %v359_v12 = vld [vmem:[%s475_s1 + $0x10] sm:$0xff]  }
   0x5   :  { %v366_v11 = vld [vmem:[%s476_s0 + $0x4] ss:$8 sps:$4 sm:$0xff]   ;;  %v364_v17 = vld [vmem:[%s476_s0] ss:$8 sps:$4 sm:$0xff]  }
   0x6   :  { %204 = vmatprep.mubr.bf16.mxu0 %v366_v11  ;;  %v360_v13 = vld [vmem:[%s475_s1 + $0x48] sm:$0xff]   ;;  %v362_v15 = vld [vmem:[%s475_s1 + $0x40] sm:$0xff]  }
   0x7   :  { %329 = vmatpush3.bf16.msra.mxu0 %v351_v3  ;;  %v361_v14 = vld [vmem:[%s475_s1 + $0x8] sm:$0xff]   ;;  %v363_v16 = vld [vmem:[%s475_s1] sm:$0xff]  }
   0x8   :  { %330 = vmatprep.subr.bf16.mxu0 %v352_v4  ;;  %v318_v19 = vld [vmem:[%s477_s3] sm:$0xff]  }
   0x9   :  { %v310_v21 = vld [vmem:[%s478_s2] ss:$0 sm:$0xff]  ;;  %v319_v23 = vunpack.c.l.bf16 %v318_v19  ;;  %v320_v29 = vunpack.c.h.bf16 %v318_v19 }
   0xa   :  { %v311_v48 = vld [vmem:[%s479_s4] ss:$0 sm:$0xff] }
   0xb   :  { %331 = vmatpush3.bf16.msra.mxu0 %v353_v5  ;;  %v312_v52 = vld [vmem:[%s480_s5] ss:$0 sm:$0xff] }
   0xc   :  { %332 = vmatprep.subr.bf16.mxu0 %v354_v6 }
   0xf   :  { %333 = vmatpush3.bf16.msra.mxu0 %v355_v7 }
  0x10   :  { %334 = vmatprep.subr.bf16.mxu0 %v356_v8 }
  0x13   :  { %335 = vmatpush3.bf16.msra.mxu0 %v357_v9 }
  0x14   :  { %336 = vmatprep.subr.bf16.mxu0 %v358_v10 }
  0x17   :  { %337 = vmatpush3.bf16.msra.mxu0 %v359_v12 }
  0x18   :  { %338 = vmatprep.subr.bf16.mxu0 %v360_v13 }
  0x1b   :  { %339 = vmatpush3.bf16.msra.mxu0 %v361_v14 }
  0x1c   :  { %340 = vmatprep.subr.bf16.mxu0 %v362_v15 }
  0x1f   :  { %341 = vmatpush3.bf16.msra.mxu0 %v363_v16 }
  0x22   :  { %205 = vmatmul.mubr.bf16.vlgmr.msra.gmra.mxu0 %v364_v17 }
  0xe2   :  { %v342_v18 = vpop.f32.mrf.mxu0 }
  0xe4   :  { %v343_v20 = vpop.f32.mrf.mxu0 }
  0xe5   :  { %v344_v22 = vadd.f32 %v343_v20, %v342_v18 }
  0xe6   :  { %v345_v24 = vpop.f32.mrf.mxu0 }
  0xe7   :  { %v229_v25 = vadd.f32 %v344_v22, %v310_v21 }
  0xe8   :  { %v346_v26 = vpop.f32.mrf.mxu0 }
  0xe9   :  { %v347_v27 = vadd.f32 %v346_v26, %v345_v24  ;;  %v235_v28 = vadd.f32 %v319_v23, %v229_v25 }
  0xeb   :  { %v230_v30 = vadd.f32 %v347_v27, %v310_v21  ;;  %237 = vadd.xlane.f32.xlu0 %v235_v28 }
  0xed   :  { %v236_v31 = vadd.f32 %v320_v29, %v230_v30 }
  0xef   :  { %239 = vadd.xlane.f32.xlu0 %v236_v31 }
 0x174   :  { %v238_v32 = vpop.xlane.xlu0 %237 }
 0x175   :  { %v242_v33 = vmul.f32 0.0078125, %v238_v32 }
 0x177   :  { %v244_v34 = vsub.f32 %v235_v28, %v242_v33 }
 0x178   :  { %v240_v35 = vpop.xlane.xlu0 %239 }
 0x179   :  { %v243_v36 = vmul.f32 0.0078125, %v240_v35  ;;  %v246_v37 = vmul.f32 %v244_v34, %v244_v34 }
 0x17b   :  { %v245_v38 = vsub.f32 %v236_v31, %v243_v36  ;;  %248 = vadd.xlane.f32.xlu1 %v246_v37 }
 0x17d   :  { %v247_v39 = vmul.f32 %v245_v38, %v245_v38 }
 0x17f   :  { %250 = vadd.xlane.f32.xlu1 %v247_v39 }
 0x204   :  { %v249_v40 = vpop.xlane.xlu1 %248 }
 0x205   :  { %v252_v41 = vmul.f32 0.0078125, %v249_v40 }
 0x207   :  { %v254_v42 = vadd.f32 1e-07, %v252_v41 }
 0x208   :  { %v251_v43 = vpop.xlane.xlu1 %250 }
 0x209   :  { %367 = vrsqrt.f32 %v254_v42  ;;  %v253_v44 = vmul.f32 0.0078125, %v251_v43 }
 0x20b   :  { %v255_v45 = vadd.f32 1e-07, %v253_v44 }
 0x20d   :  { %369 = vrsqrt.f32 %v255_v45 }
 0x216   :  { %v368_v46 = vpop.eup %367 }
 0x217   :  { %v258_v47 = vmul.f32 %v368_v46, %v244_v34 }
 0x219   :  { %v267_v50 = vmul.f32 %v311_v48, %v258_v47 }
 0x21a   :  { %v370_v49 = vpop.eup %369 }
 0x21b   :  { %v259_v51 = vmul.f32 %v370_v49, %v245_v38  ;;  %v276_v54 = vadd.f32 %v312_v52, %v267_v50 }
 0x21d   :  { %v268_v53 = vmul.f32 %v311_v48, %v259_v51 }
 0x21f   :  { %v277_v55 = vadd.f32 %v312_v52, %v268_v53 }
 0x221   :  { %v324_v56 = vpack.c.bf16 %v277_v55, %v276_v54 }
 0x223   :  { %325 = vst [vmem:[%s481_s6] sm:$0xff] %v324_v56  }

</bundles_post_ra>
